<compile_context>
chip_gen: v6e
topology: v6e:2x2x1
jax: 0.10.0
libtpu: 0.0.40
codegen_flags: <defaults>
</compile_context>

<pallas_src>
import functools

import jax
import jax.numpy as jnp
from jax.experimental import pallas as pl
from jax.experimental.pallas import tpu as pltpu


def _pick_num_k_tiles(c_in: int, preferred=(3, 2, 4, 5, 6)) -> int:
    """Number of K tiles: must divide C_in exactly and give a tile that is a
    multiple of 8 (sublane rule). Falls back to 1 (no K tiling)."""
    for n in preferred:
        if n > 1 and c_in % n == 0 and (c_in // n) % 8 == 0:
            return n
    return 1


def _conv1x1_kernel(w_ref, x_ref, o_ref, acc_ref, *, compute_dtype):
    # w_ref:   (tk, C_out)     K-tile of the pre-transposed weight
    # x_ref:   (1, tk, HW)     K-tile of this batch element's activations
    # o_ref:   (1, C_out, HW)  output (resident across the K axis)
    # acc_ref: (C_out, HW)     f32 VMEM accumulator scratch
    k = pl.program_id(1)

    @pl.when(k == 0)
    def _init():
        acc_ref[...] = jnp.zeros_like(acc_ref)

    w = w_ref[...]                       # already in compute_dtype (pre-cast once)
    x = x_ref[0].astype(compute_dtype)   # in-VMEM cast; no-op for f32

    # acc[C_out, HW] += sum_k W[k, C_out] * X[k, HW]
    # ("lhs-transposed" MXU matmul; contracting the shared sublane K dim.)
    acc_ref[...] += jax.lax.dot_general(
        w, x,
        dimension_numbers=(((0,), (0,)), ((), ())),
        preferred_element_type=jnp.float32,
    )

    @pl.when(k == pl.num_programs(1) - 1)
    def _store():
        o_ref[0] = acc_ref[...].astype(o_ref.dtype)


def make_conv2d_1x1(weight_oihw: jax.Array, *, compute_dtype=jnp.float32):
    """Build a pointwise-conv callable with the weight prepared ONCE.

    weight_oihw: (C_out, C_in, 1, 1)   (bias=False)
    compute_dtype: jnp.float32 (exact module numerics, default) or
                   jnp.bfloat16 (bf16 MXU operands + f32 accumulation;
                   recommended on v5e, slightly different numerics).
    Returns apply(x_nchw: (N, C_in, H, W)) -> (N, C_out, H, W).
    """
    C_out, C_in = weight_oihw.shape[0], weight_oihw.shape[1]

    # ---- one-time parameter prep (not in the per-call path) ----------------
    # (C_out, C_in, 1, 1) -> (C_in, C_out): K becomes the sublane dim so the
    # BlockSpec can tile it with tk % 8 == 0, and no transposes are ever
    # needed at call time.
    w_kn = jnp.asarray(weight_oihw).reshape(C_out, C_in).T
    if compute_dtype == jnp.bfloat16:
        w_kn = w_kn.astype(jnp.bfloat16)   # halves the weight HBM traffic, for free

    num_k = _pick_num_k_tiles(C_in)
    tk = C_in // num_k

    kernel = functools.partial(_conv1x1_kernel, compute_dtype=compute_dtype)

    @jax.jit
    def apply(x_nchw: jax.Array) -> jax.Array:
        N, c_in, H, W = x_nchw.shape
        assert c_in == C_in, (c_in, C_in)
        HW = H * W
        out_dtype = x_nchw.dtype

        # Contiguous (free) reshape — no transposes, no casts in the wrapper.
        x_mat = x_nchw.reshape(N, C_in, HW)

        bytes_accessed = (
            x_mat.size * x_mat.dtype.itemsize
            + w_kn.size * w_kn.dtype.itemsize
            + N * C_out * HW * jnp.dtype(out_dtype).itemsize
        )
        cost = pl.CostEstimate(
            flops=2 * N * HW * C_in * C_out,
            bytes_accessed=bytes_accessed,
            transcendentals=0,
        )

        out = pl.pallas_call(
            kernel,
            out_shape=jax.ShapeDtypeStruct((N, C_out, HW), out_dtype),
            grid=(N, num_k),  # batch (parallel) x contraction (reduction, last)
            in_specs=[
                # Weight K-tile: (tk, C_out); lane dim = full C_out, sublane = tk (%8==0).
                pl.BlockSpec((tk, C_out), lambda n, k: (k, 0)),
                # Activation K-tile for this batch element.
                pl.BlockSpec((1, tk, HW), lambda n, k: (n, k, 0)),
            ],
            # Output resident across the K axis; written once at the last k.
            out_specs=pl.BlockSpec((1, C_out, HW), lambda n, k: (n, 0, 0)),
            scratch_shapes=[pltpu.VMEM((C_out, HW), jnp.float32)],
            compiler_params=pltpu.CompilerParams(
                dimension_semantics=("parallel", "arbitrary"),
            ),
            cost_estimate=cost,
        )(w_kn, x_mat)

        # (N, C_out, HW) -> (N, C_out, H, W): contiguous, free.
        return out.reshape(N, C_out, H, W)

    return apply


if __name__ == "__main__":
    key = jax.random.PRNGKey(0)
    kx, kw = jax.random.split(key)

    # Shapes implied by the module: Conv2d(1200, 200, 1x1) on [1, 1200, 14, 14].
    N, C_in, H, W, C_out = 1, 1200, 14, 14, 200
    x = jax.random.normal(kx, (N, C_in, H, W), dtype=jnp.float32)
    # Deterministic synthetic weight (stand-in for the module parameter).
    weight = jax.random.normal(kw, (C_out, C_in, 1, 1), dtype=jnp.float32) * 0.02

    # Plain-JAX reference of the same 1x1 conv.
    ref = jnp.einsum("nchw,oc->nohw", x, weight.reshape(C_out, C_in))

    # f32 path (exact module semantics) — weight prepared once at setup.
    conv_f32 = make_conv2d_1x1(weight)
    y = jax.block_until_ready(conv_f32(x))
    assert y.shape == (N, C_out, H, W)
    assert jnp.allclose(y, ref, atol=1e-3, rtol=1e-3)

    # bf16-operand path (v5e-targeted; weight pre-cast once, X cast in-kernel,
    # f32 accumulation kept) — looser tolerance, numerics intentionally differ.
    conv_bf16 = make_conv2d_1x1(weight, compute_dtype=jnp.bfloat16)
    y_bf16 = jax.block_until_ready(conv_bf16(x))
    assert jnp.allclose(y_bf16, ref, atol=5e-2, rtol=5e-2)

    print("KERNEL_OK")
</pallas_src>

<mosaic_0001>
module attributes {stable_mosaic.version = 11 : i64} {
  func.func @_conv1x1_kernel(%arg0: i32, %arg1: i32, %arg2: memref<400x200xf32, #tpu.memory_space<vmem>>, %arg3: memref<1x400x196xf32, #tpu.memory_space<vmem>>, %arg4: memref<1x200x196xf32, #tpu.memory_space<vmem>>, %arg5: memref<200x196xf32, #tpu.memory_space<vmem>>) attributes {dimension_semantics = [#tpu.dimension_semantics<parallel>, #tpu.dimension_semantics<arbitrary>], iteration_bounds = array<i64: 1, 3>, scalar_prefetch = 0 : i64, scratch_operands = 1 : i64, tpu.core_type = #tpu.core_type<tc>, window_params = [{transform_indices = @transform_0, window_bounds = array<i64: 400, 200>}, {transform_indices = @transform_1, window_bounds = array<i64: 1, 400, 196>}, {transform_indices = @transform_2, window_bounds = array<i64: 1, 200, 196>}]} {
    %c0_i32 = arith.constant 0 : i32
    %0 = arith.cmpi eq, %arg1, %c0_i32 : i32
    %1 = arith.extui %0 : i1 to i32
    %c0_i32_0 = arith.constant 0 : i32
    %2 = arith.cmpi ne, %1, %c0_i32_0 : i32
    scf.if %2 {
      %cst_10 = arith.constant 0.000000e+00 : f32
      %13 = vector.broadcast %cst_10 : f32 to vector<200x196xf32>
      %c0_11 = arith.constant 0 : index
      %c0_12 = arith.constant 0 : index
      %14 = vector.load %arg5[%c0_11, %c0_12] : memref<200x196xf32, #tpu.memory_space<vmem>>, vector<200x196xf32>
      tpu.vector_store %arg5[%c0_11, %c0_12], %13 {strides = array<i32>} : memref<200x196xf32, #tpu.memory_space<vmem>>, vector<200x196xf32>,
    } else {
    }
    %c0 = arith.constant 0 : index
    %c0_1 = arith.constant 0 : index
    %3 = vector.load %arg2[%c0, %c0_1] : memref<400x200xf32, #tpu.memory_space<vmem>>, vector<400x200xf32>
    %c0_2 = arith.constant 0 : index
    %c0_3 = arith.constant 0 : index
    %c0_4 = arith.constant 0 : index
    %4 = vector.load %arg3[%c0_2, %c0_3, %c0_4] : memref<1x400x196xf32, #tpu.memory_space<vmem>>, vector<1x400x196xf32>
    %5 = vector.shape_cast %4 : vector<1x400x196xf32> to vector<400x196xf32>
    %c0_5 = arith.constant 0 : index
    %c0_6 = arith.constant 0 : index
    %6 = vector.load %arg5[%c0_5, %c0_6] : memref<200x196xf32, #tpu.memory_space<vmem>>, vector<200x196xf32>
    %cst = arith.constant dense<0.000000e+00> : vector<200x196xf32>
    %7 = tpu.matmul %3, %5, %cst {dimension_numbers = #tpu.dot_dimension_numbers<[0], [0], [1], [1], [0, 1, 1, 1], [], []>} : vector<400x200xf32>, vector<400x196xf32>, vector<200x196xf32> -> vector<200x196xf32>
    %8 = arith.addf %6, %7 : vector<200x196xf32>
    %c0_7 = arith.constant 0 : index
    %c0_8 = arith.constant 0 : index
    %9 = vector.load %arg5[%c0_7, %c0_8] : memref<200x196xf32, #tpu.memory_space<vmem>>, vector<200x196xf32>
    tpu.vector_store %arg5[%c0_7, %c0_8], %8 {strides = array<i32>} : memref<200x196xf32, #tpu.memory_space<vmem>>, vector<200x196xf32>,
    %c2_i32 = arith.constant 2 : i32
    %10 = arith.cmpi eq, %arg1, %c2_i32 : i32
    %11 = arith.extui %10 : i1 to i32
    %c0_i32_9 = arith.constant 0 : i32
    %12 = arith.cmpi ne, %11, %c0_i32_9 : i32
    scf.if %12 {
      %c0_10 = arith.constant 0 : index
      %c0_11 = arith.constant 0 : index
      %13 = vector.load %arg5[%c0_10, %c0_11] : memref<200x196xf32, #tpu.memory_space<vmem>>, vector<200x196xf32>
      %c0_12 = arith.constant 0 : index
      %c0_13 = arith.constant 0 : index
      %c0_14 = arith.constant 0 : index
      %14 = vector.load %arg4[%c0_12, %c0_13, %c0_14] : memref<1x200x196xf32, #tpu.memory_space<vmem>>, vector<1x200x196xf32>
      %15 = vector.shape_cast %14 : vector<1x200x196xf32> to vector<200x196xf32>
      %16 = vector.shape_cast %13 : vector<200x196xf32> to vector<1x200x196xf32>
      tpu.vector_store %arg4[%c0_12, %c0_13, %c0_14], %16 {strides = array<i32>} : memref<1x200x196xf32, #tpu.memory_space<vmem>>, vector<1x200x196xf32>,
    } else {
    }
    return
  }
  func.func @transform_0(%arg0: i32, %arg1: i32) -> (i32, i32) {
    %c0_i32 = arith.constant 0 : i32
    %c0_i32_0 = arith.constant 0 : i32
    return %arg1, %c0_i32 : i32, i32
  }
  func.func @transform_1(%arg0: i32, %arg1: i32) -> (i32, i32, i32) {
    %c0_i32 = arith.constant 0 : i32
    %c0_i32_0 = arith.constant 0 : i32
    return %arg0, %arg1, %c0_i32 : i32, i32, i32
  }
  func.func @transform_2(%arg0: i32, %arg1: i32) -> (i32, i32, i32) {
    %c0_i32 = arith.constant 0 : i32
    %c0_i32_0 = arith.constant 0 : i32
    %c0_i32_1 = arith.constant 0 : i32
    return %arg0, %c0_i32, %c0_i32_0 : i32, i32, i32
  }
}

</mosaic_0001>

<bundles_post_ra>
// kernel: apply.1
= control target key start
LH: loop header
LB: loop body
LE: loop exit
PB: predicated region body
PF: predicated region fallthrough
CT: control target
= control target key end

     0   :  { %s1849_s9 = smov 0   ;;  %s1851_s10 = smov 0   ;;  %s2476_s0 = inlined_call_operand.vmem [shape: f32[1200,200], index: 0, kind: input, shape index: {}]   ;;  %s2477_s1 = inlined_call_operand.vmem [shape: f32[1,1200,196], index: 1, kind: input, shape index: {}]   ;;  %s2478_s2 = inlined_call_operand.vmem [shape: f32[1,200,196], index: 2, kind: output, shape index: {}]  }
   0x1   :  { %s1853_s11 = smov 0  }
   0x2 LB: > { %s21_s12 = sadd.s32 1, %s1827_s10  ;;  %p1557_p0 = scmp.ge.s32.totalorder %s1831_s11, 1  ;;  %s1831_s11 = sphi %s1853_s11, %s12_s11   ;;  %s1827_s10 = sphi %s1851_s10, %s2480_s10   ;;  %s1823_s9 = sphi %s1849_s9, %s2479_s9  }
   0x3   : > { %p22_p1 = scmp.ge.s32.totalorder %s21_s12, 3  ;;  %p144_p2 = scmp.lt.s32.totalorder %s1831_s11, 4 }
   0x5   : > { %s2482_s12 = smov (%p22_p1, %s21_s12), 0  ;;  %p145_p3 = pnand %p1557_p0, %p144_p2 }
   0x6   : > { %s177_s13 = smul.u32 (!%p145_p3), 50, %s1823_s9  ;;  %p1562_p5 = scmp.ne.s32.totalorder (!%p145_p3), %s1823_s9, 0 }
   0x7   : > { %148 = sbr.rel (%p145_p3) target bundleno = 559 (0x22f), region = 28 }
   0x8   : > { %p178_p4 = scmp.lt.s32.totalorder (!%p145_p3), %s177_s13, 149 }
   0xc   : > { %s2484_s13 = smov (!%p178_p4, %s177_s13), 149  ;;  %203 = sbr.rel (%p1562_p5) target bundleno = 43 (0x2b), region = 32 }
   0xd   : > { %s1592_s14 = sshll.u32 %s2484_s13, 4 }
   0xe   : > { %s1873_s17 = scalar_lea.vmem %s2476_s0, %s1592_s14  ;;  %s1878_s20 = scalar_lea.vmem %s2477_s1, %s1592_s14 }
  0x11   : > { %vm205_vm0 = vcmask 556032   ;;  %v1833_v0 = vmov 0.0  }
  0x12   : > { %204 = vst [vmem:[#allocation2] sm:$0xff] %v1833_v0  ;;  %207 = vst [vmem:[#allocation2 + $0x10] sm:$0xff] %v1833_v0 }
  0x13   : > { %209 = vst [vmem:[#allocation2 + $0x20] sm:$0xff] %v1833_v0  ;;  %211 = vst [vmem:[#allocation2 + $0x30] sm:$0xff] %v1833_v0 }
  0x14   : > { %213 = vst [vmem:[#allocation2 + $0x40] sm:$0xff] %v1833_v0  ;;  %215 = vst [vmem:[#allocation2 + $0x50] sm:$0xff] %v1833_v0 }
  0x15   : > { %217 = vst [vmem:[#allocation2 + $0x60] sm:$0xff] %v1833_v0  ;;  %219 = vst [vmem:[#allocation2 + $0x70] sm:$0xff] %v1833_v0 }
  0x16   : > { %221 = vst [vmem:[#allocation2 + $0x80] sm:$0xff] %v1833_v0  ;;  %223 = vst [vmem:[#allocation2 + $0x90] sm:$0xff] %v1833_v0 }
  0x17   : > { %225 = vst [vmem:[#allocation2 + $0xa0] sm:$0xff] %v1833_v0  ;;  %227 = vst [vmem:[#allocation2 + $0xb0] sm:$0xff] %v1833_v0 }
  0x18   : > { %229 = vst [vmem:[#allocation2 + $0xc0] sm:$0xff] %v1833_v0  ;;  %231 = vst [vmem:[#allocation2 + $0xd0] sm:$0xff] %v1833_v0 }
  0x19   : > { %233 = vst [vmem:[#allocation2 + $0xe0] sm:$0xff] %v1833_v0  ;;  %235 = vst [vmem:[#allocation2 + $0xf0] sm:$0xff] %v1833_v0 }
  0x1a   : > { %237 = vst [vmem:[#allocation2 + $0x100] sm:$0xff] %v1833_v0  ;;  %239 = vst [vmem:[#allocation2 + $0x110] sm:$0xff] %v1833_v0 }
  0x1b   : > { %241 = vst [vmem:[#allocation2 + $0x120] sm:$0xff] %v1833_v0  ;;  %243 = vst [vmem:[#allocation2 + $0x130] sm:$0xff] %v1833_v0 }
  0x1c   : > { %245 = vst [vmem:[#allocation2 + $0x140] sm:$0xff] %v1833_v0  ;;  %247 = vst [vmem:[#allocation2 + $0x150] sm:$0xff] %v1833_v0 }
  0x1d   : > { %249 = vst [vmem:[#allocation2 + $0x160] sm:$0xff] %v1833_v0  ;;  %251 = vst [vmem:[#allocation2 + $0x170] sm:$0xff] %v1833_v0 }
  0x1e   : > { %253 = vst [vmem:[#allocation2 + $0x180] sm:$0xff] %v1833_v0  ;;  %206 = vst.msk [vmem:[#allocation2 + $0x8] sm:$0xff] %vm205_vm0, %v1833_v0 }
  0x1f   : > { %208 = vst.msk [vmem:[#allocation2 + $0x18] sm:$0xff] %vm205_vm0, %v1833_v0  ;;  %210 = vst.msk [vmem:[#allocation2 + $0x28] sm:$0xff] %vm205_vm0, %v1833_v0 }
  0x20   : > { %212 = vst.msk [vmem:[#allocation2 + $0x38] sm:$0xff] %vm205_vm0, %v1833_v0  ;;  %214 = vst.msk [vmem:[#allocation2 + $0x48] sm:$0xff] %vm205_vm0, %v1833_v0 }
  0x21   : > { %216 = vst.msk [vmem:[#allocation2 + $0x58] sm:$0xff] %vm205_vm0, %v1833_v0  ;;  %218 = vst.msk [vmem:[#allocation2 + $0x68] sm:$0xff] %vm205_vm0, %v1833_v0 }
  0x22   : > { %220 = vst.msk [vmem:[#allocation2 + $0x78] sm:$0xff] %vm205_vm0, %v1833_v0  ;;  %222 = vst.msk [vmem:[#allocation2 + $0x88] sm:$0xff] %vm205_vm0, %v1833_v0 }
  0x23   : > { %224 = vst.msk [vmem:[#allocation2 + $0x98] sm:$0xff] %vm205_vm0, %v1833_v0  ;;  %226 = vst.msk [vmem:[#allocation2 + $0xa8] sm:$0xff] %vm205_vm0, %v1833_v0 }
  0x24   : > { %228 = vst.msk [vmem:[#allocation2 + $0xb8] sm:$0xff] %vm205_vm0, %v1833_v0  ;;  %230 = vst.msk [vmem:[#allocation2 + $0xc8] sm:$0xff] %vm205_vm0, %v1833_v0 }
  0x25   : > { %232 = vst.msk [vmem:[#allocation2 + $0xd8] sm:$0xff] %vm205_vm0, %v1833_v0  ;;  %234 = vst.msk [vmem:[#allocation2 + $0xe8] sm:$0xff] %vm205_vm0, %v1833_v0 }
  0x26   : > { %236 = vst.msk [vmem:[#allocation2 + $0xf8] sm:$0xff] %vm205_vm0, %v1833_v0  ;;  %238 = vst.msk [vmem:[#allocation2 + $0x108] sm:$0xff] %vm205_vm0, %v1833_v0 }
  0x27   : > { %240 = vst.msk [vmem:[#allocation2 + $0x118] sm:$0xff] %vm205_vm0, %v1833_v0  ;;  %242 = vst.msk [vmem:[#allocation2 + $0x128] sm:$0xff] %vm205_vm0, %v1833_v0 }
  0x28   : > { %244 = vst.msk [vmem:[#allocation2 + $0x138] sm:$0xff] %vm205_vm0, %v1833_v0  ;;  %246 = vst.msk [vmem:[#allocation2 + $0x148] sm:$0xff] %vm205_vm0, %v1833_v0 }
  0x29   : > { %248 = vst.msk [vmem:[#allocation2 + $0x158] sm:$0xff] %vm205_vm0, %v1833_v0  ;;  %250 = vst.msk [vmem:[#allocation2 + $0x168] sm:$0xff] %vm205_vm0, %v1833_v0 }
  0x2a   : > { %252 = vst.msk [vmem:[#allocation2 + $0x178] sm:$0xff] %vm205_vm0, %v1833_v0  ;;  %254 = vst.msk [vmem:[#allocation2 + $0x188] sm:$0xff] %vm205_vm0, %v1833_v0 }
  0x2b PF: > { %v351_v1 = vld [vmem:[%s1873_s17 + $0x300] sm:$0xff]  ;;  %v257_v5 = vld [vmem:[%s1873_s17 + $0x10] sm:$0xff]  ;;  %v386_v20 = vld [vmem:[%s1878_s20 + $0xf8] sm:$0xff]  ;;  %vm761_vm1 = vcmask 130048   ;;  %vm1318_vm2 = vcmask 556032   ;;  %p1588_p6 = scmp.ne.s32.totalorder %s1823_s9, 2 }
  0x2c   : > { %v255_v2 = vld [vmem:[%s1873_s17] sm:$0xff]  ;;  %697 = vxpose.xlu1.b32.start [1/2] (short) %v351_v1, 128  ;;  %v289_v6 = vld [vmem:[%s1873_s17 + $0x110] sm:$0xff]  ;;  %837 = vmatprep.subr.mxu0 %v386_v20  ;;  %v384_v23 = vld [vmem:[%s1878_s20 + $0xe8] sm:$0xff] }
  0x2d   : > { %v287_v3 = vld [vmem:[%s1873_s17 + $0x100] sm:$0xff]  ;;  %v353_v7 = vld [vmem:[%s1873_s17 + $0x310] sm:$0xff]  ;;  %v1622_v8 = vpack.i.bf16 %v257_v5, %v289_v6  ;;  %v382_v27 = vld [vmem:[%s1878_s20 + $0xd8] sm:$0xff] }
  0x2e   : > { %v1620_v4 = vpack.i.bf16 %v255_v2, %v287_v3  ;;  %v259_v9 = vld [vmem:[%s1873_s17 + $0x20] sm:$0xff]  ;;  %v261_v12 = vld [vmem:[%s1873_s17 + $0x30] sm:$0xff]  ;;  %v380_v29 = vld [vmem:[%s1878_s20 + $0xc8] sm:$0xff] }
  0x2f   : > { %v291_v10 = vld [vmem:[%s1873_s17 + $0x120] sm:$0xff]  ;;  %v293_v13 = vld [vmem:[%s1873_s17 + $0x130] sm:$0xff]  ;;  %v378_v34 = vld [vmem:[%s1878_s20 + $0xb8] sm:$0xff] }
  0x30   : > { %1621 = vxpose.xlu0.b32.start [1/16] %v1620_v4, 128  ;;  %698 = vxpose.xlu1.b32.end [2/2] (short) %v353_v7, 128  ;;  %v1624_v11 = vpack.i.bf16 %v259_v9, %v291_v10  ;;  %v1626_v14 = vpack.i.bf16 %v261_v12, %v293_v13  ;;  %v263_v15 = vld [vmem:[%s1873_s17 + $0x40] sm:$0xff]  ;;  %v265_v18 = vld [vmem:[%s1873_s17 + $0x50] sm:$0xff]  ;;  %v376_v36 = vld [vmem:[%s1878_s20 + $0xa8] sm:$0xff] }
  0x31   : > { %v295_v16 = vld [vmem:[%s1873_s17 + $0x140] sm:$0xff]  ;;  %v297_v19 = vld [vmem:[%s1873_s17 + $0x150] sm:$0xff]  ;;  %v374_v41 = vld [vmem:[%s1878_s20 + $0x98] sm:$0xff] }
  0x32   : > { %v1628_v17 = vpack.i.bf16 %v263_v15, %v295_v16  ;;  %v385_v21 = vld [vmem:[%s1878_s20 + $0xf0] sm:$0xff]  ;;  %v1630_v22 = vpack.i.bf16 %v265_v18, %v297_v19  ;;  %v383_v24 = vld [vmem:[%s1878_s20 + $0xe0] sm:$0xff]  ;;  %v372_v43 = vld [vmem:[%s1878_s20 + $0x88] sm:$0xff] }
  0x33   : > { %v267_v25 = vld [vmem:[%s1873_s17 + $0x60] sm:$0xff]  ;;  %838 = vmatpush1.msra.mxu0 %v385_v21  ;;  %v381_v28 = vld [vmem:[%s1878_s20 + $0xd0] sm:$0xff]  ;;  %v370_v48 = vld [vmem:[%s1878_s20 + $0x78] sm:$0xff] }
  0x34   : > { %1623 = vxpose.xlu0.b32.cont [2/16] %v1622_v8, 128  ;;  %v299_v26 = vld [vmem:[%s1873_s17 + $0x160] sm:$0xff]  ;;  %839 = vmatprep.subr.mxu0 %v384_v23  ;;  %v269_v32 = vld [vmem:[%s1873_s17 + $0x70] sm:$0xff]  ;;  %v368_v50 = vld [vmem:[%s1878_s20 + $0x68] sm:$0xff] }
  0x35   : > { %840 = vmatpush1.msra.mxu0 %v383_v24  ;;  %v1632_v30 = vpack.i.bf16 %v267_v25, %v299_v26  ;;  %v379_v31 = vld [vmem:[%s1878_s20 + $0xc0] sm:$0xff]  ;;  %v301_v33 = vld [vmem:[%s1873_s17 + $0x170] sm:$0xff]  ;;  %v366_v55 = vld [vmem:[%s1878_s20 + $0x58] sm:$0xff] }
  0x36   : > { %841 = vmatprep.subr.mxu0 %v382_v27  ;;  %v377_v35 = vld [vmem:[%s1878_s20 + $0xb0] sm:$0xff]  ;;  %v1634_v37 = vpack.i.bf16 %v269_v32, %v301_v33  ;;  %v375_v38 = vld [vmem:[%s1878_s20 + $0xa0] sm:$0xff]  ;;  %v364_v57 = vld [vmem:[%s1878_s20 + $0x48] sm:$0xff] }
  0x37   : > { %842 = vmatpush1.msra.mxu0 %v381_v28  ;;  %v271_v39 = vld [vmem:[%s1873_s17 + $0x80] sm:$0xff]  ;;  %v373_v42 = vld [vmem:[%s1878_s20 + $0x90] sm:$0xff]  ;;  %v362_v62 = vld [vmem:[%s1878_s20 + $0x38] sm:$0xff] }
  0x38   : > { %1625 = vxpose.xlu0.b32.cont [3/16] %v1624_v11, 128  ;;  %843 = vmatprep.subr.mxu0 %v380_v29  ;;  %v303_v40 = vld [vmem:[%s1873_s17 + $0x180] sm:$0xff]  ;;  %v273_v46 = vld [vmem:[%s1873_s17 + $0x90] sm:$0xff]  ;;  %v360_v0 = vld [vmem:[%s1878_s20 + $0x28] sm:$0xff] }
  0x39   : > { %844 = vmatpush1.msra.mxu0 %v379_v31  ;;  %v1636_v44 = vpack.i.bf16 %v271_v39, %v303_v40  ;;  %v371_v45 = vld [vmem:[%s1878_s20 + $0x80] sm:$0xff]  ;;  %v305_v47 = vld [vmem:[%s1873_s17 + $0x190] sm:$0xff]  ;;  %v358_v5 = vld [vmem:[%s1878_s20 + $0x18] sm:$0xff] }
  0x3a   : > { %845 = vmatprep.subr.mxu0 %v378_v34  ;;  %v369_v49 = vld [vmem:[%s1878_s20 + $0x70] sm:$0xff]  ;;  %v1638_v51 = vpack.i.bf16 %v273_v46, %v305_v47  ;;  %v367_v52 = vld [vmem:[%s1878_s20 + $0x60] sm:$0xff]  ;;  %v356_v7 = vld [vmem:[%s1878_s20 + $0x8] sm:$0xff] }
  0x3b   : > { %846 = vmatpush1.msra.mxu0 %v377_v35  ;;  %v275_v53 = vld [vmem:[%s1873_s17 + $0xa0] sm:$0xff]  ;;  %v365_v56 = vld [vmem:[%s1878_s20 + $0x50] sm:$0xff]  ;;  %v418_v12 = vld [vmem:[%s1878_s20 + $0x1f8] sm:$0xff] }
  0x3c   : > { %1627 = vxpose.xlu0.b32.cont [4/16] %v1626_v14, 128  ;;  %847 = vmatprep.subr.mxu0 %v376_v36  ;;  %v307_v54 = vld [vmem:[%s1873_s17 + $0x1a0] sm:$0xff]  ;;  %v277_v60 = vld [vmem:[%s1873_s17 + $0xb0] sm:$0xff]  ;;  %v416_v15 = vld [vmem:[%s1878_s20 + $0x1e8] sm:$0xff] }
  0x3d   : > { %848 = vmatpush1.msra.mxu0 %v375_v38  ;;  %v1640_v58 = vpack.i.bf16 %v275_v53, %v307_v54  ;;  %v363_v59 = vld [vmem:[%s1878_s20 + $0x40] sm:$0xff]  ;;  %v309_v61 = vld [vmem:[%s1873_s17 + $0x1b0] sm:$0xff]  ;;  %v450_v18 = vld [vmem:[%s1878_s20 + $0x2f8] sm:$0xff] }
  0x3e   : > { %849 = vmatprep.subr.mxu0 %v374_v41  ;;  %v361_v63 = vld [vmem:[%s1878_s20 + $0x30] sm:$0xff]  ;;  %v1642_v1 = vpack.i.bf16 %v277_v60, %v309_v61  ;;  %v359_v2 = vld [vmem:[%s1878_s20 + $0x20] sm:$0xff]  ;;  %v414_v21 = vld [vmem:[%s1878_s20 + $0x1d8] sm:$0xff]  ;;  %1052 = vmatprep.subr.mxu1 %v450_v18 }
  0x3f   : > { %850 = vmatpush1.msra.mxu0 %v373_v42  ;;  %v279_v3 = vld [vmem:[%s1873_s17 + $0xc0] sm:$0xff]  ;;  %v357_v6 = vld [vmem:[%s1878_s20 + $0x10] sm:$0xff]  ;;  %v412_v25 = vld [vmem:[%s1878_s20 + $0x1c8] sm:$0xff] }
  0x40   : > { %1629 = vxpose.xlu0.b32.cont [5/16] %v1628_v17, 128  ;;  %851 = vmatprep.subr.mxu0 %v372_v43  ;;  %v311_v4 = vld [vmem:[%s1873_s17 + $0x1c0] sm:$0xff]  ;;  %v281_v10 = vld [vmem:[%s1873_s17 + $0xd0] sm:$0xff]  ;;  %v446_v26 = vld [vmem:[%s1878_s20 + $0x2d8] sm:$0xff] }
  0x41   : > { %852 = vmatpush1.msra.mxu0 %v371_v45  ;;  %v1644_v8 = vpack.i.bf16 %v279_v3, %v311_v4  ;;  %v355_v9 = vld [vmem:[%s1878_s20] sm:$0xff]  ;;  %v313_v11 = vld [vmem:[%s1873_s17 + $0x1d0] sm:$0xff]  ;;  %v410_v32 = vld [vmem:[%s1878_s20 + $0x1b8] sm:$0xff] }
  0x42   : > { %853 = vmatprep.subr.mxu0 %v370_v48  ;;  %v417_v13 = vld [vmem:[%s1878_s20 + $0x1f0] sm:$0xff]  ;;  %v283_v14 = vld [vmem:[%s1873_s17 + $0xe0] sm:$0xff]  ;;  %v1646_v16 = vpack.i.bf16 %v281_v10, %v313_v11  ;;  %v444_v34 = vld [vmem:[%s1878_s20 + $0x2c8] sm:$0xff] }
  0x43   : > { %854 = vmatpush1.msra.mxu0 %v369_v49  ;;  %v415_v17 = vld [vmem:[%s1878_s20 + $0x1e0] sm:$0xff]  ;;  %v449_v19 = vld [vmem:[%s1878_s20 + $0x2f0] sm:$0xff]  ;;  %v408_v35 = vld [vmem:[%s1878_s20 + $0x1a8] sm:$0xff] }
  0x44   : > { %1631 = vxpose.xlu0.b32.cont [6/16] %v1630_v22, 128  ;;  %855 = vmatprep.subr.mxu0 %v368_v50  ;;  %v315_v20 = vld [vmem:[%s1873_s17 + $0x1e0] sm:$0xff]  ;;  %v448_v22 = vld [vmem:[%s1878_s20 + $0x2e8] sm:$0xff]  ;;  %v413_v23 = vld [vmem:[%s1878_s20 + $0x1d0] sm:$0xff] }
  0x45   : > { %856 = vmatpush1.msra.mxu0 %v367_v52  ;;  %1053 = vmatpush1.msra.mxu1 %v449_v19  ;;  %v447_v24 = vld [vmem:[%s1878_s20 + $0x2e0] sm:$0xff]  ;;  %v1648_v27 = vpack.i.bf16 %v283_v14, %v315_v20  ;;  %v445_v29 = vld [vmem:[%s1878_s20 + $0x2d0] sm:$0xff]  ;;  %v256_v40 = vld [vmem:[%s1873_s17 + $0x8] sm:$0xff] }
  0x46   : > { %857 = vmatprep.subr.mxu0 %v366_v55  ;;  %1054 = vmatprep.subr.mxu1 %v448_v22  ;;  %v411_v28 = vld [vmem:[%s1878_s20 + $0x1c0] sm:$0xff]  ;;  %v317_v31 = vld [vmem:[%s1873_s17 + $0x1f0] sm:$0xff]  ;;  %v288_v41 = vld [vmem:[%s1873_s17 + $0x108] sm:$0xff] }
  0x47   : > { %858 = vmatpush1.msra.mxu0 %v365_v56  ;;  %1055 = vmatpush1.msra.mxu1 %v447_v24  ;;  %v409_v33 = vld [vmem:[%s1878_s20 + $0x1b0] sm:$0xff]  ;;  %v443_v36 = vld [vmem:[%s1878_s20 + $0x2c0] sm:$0xff]  ;;  %v406_v42 = vld [vmem:[%s1878_s20 + $0x198] sm:$0xff]  ;;  %v1732_v47 = vpack.i.bf16 %v256_v40, %v288_v41 }
  0x48   : > { %1633 = vxpose.xlu0.b32.cont [7/16] %v1632_v30, 128  ;;  %859 = vmatprep.subr.mxu0 %v364_v57  ;;  %v285_v30 = vld [vmem:[%s1873_s17 + $0xf0] sm:$0xff]  ;;  %v319_v38 = vld [vmem:[%s1873_s17 + $0x200] sm:$0xff]  ;;  %v404_v45 = vld [vmem:[%s1878_s20 + $0x188] sm:$0xff] }
  0x49   : > { %860 = vmatpush1.msra.mxu0 %v363_v59  ;;  %1056 = vmatprep.subr.mxu1 %v446_v26  ;;  %v407_v39 = vld [vmem:[%s1878_s20 + $0x1a0] sm:$0xff]  ;;  %v405_v43 = vld [vmem:[%s1878_s20 + $0x190] sm:$0xff]  ;;  %v258_v50 = vld [vmem:[%s1873_s17 + $0x18] sm:$0xff] }
  0x4a   : > { %861 = vmatprep.subr.mxu0 %v362_v62  ;;  %1057 = vmatpush1.msra.mxu1 %v445_v29  ;;  %v441_v46 = vld [vmem:[%s1878_s20 + $0x2b0] sm:$0xff]  ;;  %v403_v49 = vld [vmem:[%s1878_s20 + $0x180] sm:$0xff]  ;;  %v402_v52 = vld [vmem:[%s1878_s20 + $0x178] sm:$0xff] }
  0x4b   : > { %862 = vmatpush1.msra.mxu0 %v361_v63  ;;  %1058 = vmatprep.subr.mxu1 %v444_v34  ;;  %v321_v48 = vld [vmem:[%s1873_s17 + $0x210] sm:$0xff]  ;;  %v440_v54 = vld [vmem:[%s1878_s20 + $0x2a8] sm:$0xff]  ;;  %v439_v56 = vld [vmem:[%s1878_s20 + $0x2a0] sm:$0xff] }
  0x4c   : > { %1635 = vxpose.xlu0.b32.cont [8/16] %v1634_v37, 128  ;;  %863 = vmatprep.subr.mxu0 %v360_v0  ;;  %v1650_v37 = vpack.i.bf16 %v285_v30, %v317_v31  ;;  %v401_v53 = vld [vmem:[%s1878_s20 + $0x170] sm:$0xff]  ;;  %v400_v55 = vld [vmem:[%s1878_s20 + $0x168] sm:$0xff]  ;;  %v399_v59 = vld [vmem:[%s1878_s20 + $0x160] sm:$0xff] }
  0x4d   : > { %864 = vmatpush1.msra.mxu0 %v359_v2  ;;  %1059 = vmatpush1.msra.mxu1 %v443_v36  ;;  %v260_v60 = vld [vmem:[%s1873_s17 + $0x28] sm:$0xff]  ;;  %v398_v62 = vld [vmem:[%s1878_s20 + $0x158] sm:$0xff]  ;;  %v397_v63 = vld [vmem:[%s1878_s20 + $0x150] sm:$0xff] }
  0x4e   : > { %865 = vmatprep.subr.mxu0 %v358_v5  ;;  %v292_v61 = vld [vmem:[%s1873_s17 + $0x128] sm:$0xff]  ;;  %v438_v0 = vld [vmem:[%s1878_s20 + $0x298] sm:$0xff]  ;;  %v437_v2 = vld [vmem:[%s1878_s20 + $0x290] sm:$0xff] }
  0x4f   : > { %866 = vmatpush1.msra.mxu0 %v357_v6  ;;  %v1736_v3 = vpack.i.bf16 %v260_v60, %v292_v61  ;;  %v325_v4 = vld [vmem:[%s1873_s17 + $0x230] sm:$0xff]  ;;  %v395_v5 = vld [vmem:[%s1878_s20 + $0x140] sm:$0xff]  ;;  %v262_v6 = vld [vmem:[%s1873_s17 + $0x38] sm:$0xff] }
  0x50   : > { %1637 = vxpose.xlu0.b32.cont [9/16] %v1636_v44, 128  ;;  %867 = vmatprep.subr.mxu0 %v356_v7  ;;  %v442_v44 = vld [vmem:[%s1878_s20 + $0x2b8] sm:$0xff]  ;;  %v436_v10 = vld [vmem:[%s1878_s20 + $0x288] sm:$0xff]  ;;  %v327_v14 = vld [vmem:[%s1873_s17 + $0x240] sm:$0xff] }
  0x51   : > { %868 = vmatpush1.msra.mxu0 %v355_v9  ;;  %1060 = vmatprep.subr.mxu1 %v442_v44  ;;  %v294_v7 = vld [vmem:[%s1873_s17 + $0x138] sm:$0xff]  ;;  %v393_v9 = vld [vmem:[%s1878_s20 + $0x130] sm:$0xff]  ;;  %v392_v11 = vld [vmem:[%s1878_s20 + $0x128] sm:$0xff] }
  0x52   : > { %869 = vmatprep.subr.mxu0 %v418_v12  ;;  %1061 = vmatpush1.msra.mxu1 %v441_v46  ;;  %v435_v12 = vld [vmem:[%s1878_s20 + $0x280] sm:$0xff]  ;;  %v390_v18 = vld [vmem:[%s1878_s20 + $0x118] sm:$0xff]  ;;  %v389_v19 = vld [vmem:[%s1878_s20 + $0x110] sm:$0xff] }
  0x53   : > { %870 = vmatpush2.msra.mxu0 %v417_v13  ;;  %1062 = vmatprep.subr.mxu1 %v440_v54  ;;  %v1738_v13 = vpack.i.bf16 %v262_v6, %v294_v7  ;;  %v434_v20 = vld [vmem:[%s1878_s20 + $0x278] sm:$0xff]  ;;  %v433_v22 = vld [vmem:[%s1878_s20 + $0x270] sm:$0xff]  ;;  %v431_v29 = vld [vmem:[%s1878_s20 + $0x260] sm:$0xff] }
  0x54   : > { %1639 = vxpose.xlu0.b32.cont [10/16] %v1638_v51, 128  ;;  %871 = vmatprep.subr.mxu0 %v416_v15  ;;  %v290_v51 = vld [vmem:[%s1873_s17 + $0x118] sm:$0xff]  ;;  %v391_v15 = vld [vmem:[%s1878_s20 + $0x120] sm:$0xff]  ;;  %v329_v24 = vld [vmem:[%s1873_s17 + $0x250] sm:$0xff] }
  0x55   : > { %872 = vmatpush2.msra.mxu0 %v415_v17  ;;  %v1734_v57 = vpack.i.bf16 %v258_v50, %v290_v51  ;;  %1063 = vmatpush1.msra.mxu1 %v439_v56  ;;  %v296_v17 = vld [vmem:[%s1873_s17 + $0x148] sm:$0xff]  ;;  %v266_v26 = vld [vmem:[%s1873_s17 + $0x58] sm:$0xff]  ;;  %v333_v40 = vld [vmem:[%s1873_s17 + $0x270] sm:$0xff] }
  0x56   : > { %873 = vmatprep.subr.mxu0 %v414_v21  ;;  %1064 = vmatprep.subr.mxu1 %v438_v0  ;;  %v388_v21 = vld [vmem:[%s1878_s20 + $0x108] sm:$0xff]  ;;  %v430_v30 = vld [vmem:[%s1878_s20 + $0x258] sm:$0xff]  ;;  %v425_v41 = vld [vmem:[%s1878_s20 + $0x230] sm:$0xff] }
  0x57   : > { %874 = vmatpush2.msra.mxu0 %v413_v23  ;;  %1065 = vmatpush1.msra.mxu1 %v437_v2  ;;  %v268_v34 = vld [vmem:[%s1873_s17 + $0x68] sm:$0xff]  ;;  %v422_v46 = vld [vmem:[%s1878_s20 + $0x218] sm:$0xff]  ;;  %v337_v56 = vld [vmem:[%s1873_s17 + $0x290] sm:$0xff] }
  0x58   : > { %1641 = vxpose.xlu0.b32.cont [11/16] %v1640_v58, 128  ;;  %875 = vmatprep.subr.mxu0 %v412_v25  ;;  %v323_v58 = vld [vmem:[%s1873_s17 + $0x220] sm:$0xff]  ;;  %v428_v36 = vld [vmem:[%s1878_s20 + $0x248] sm:$0xff]  ;;  %v454_v54 = vld [vmem:[%s1878_s20 + $0x318] sm:$0xff] }
  0x59   : > { %876 = vmatpush2.msra.mxu0 %v411_v28  ;;  %1066 = vmatprep.subr.mxu1 %v436_v10  ;;  %v387_v25 = vld [vmem:[%s1878_s20 + $0x100] sm:$0xff]  ;;  %v432_v28 = vld [vmem:[%s1878_s20 + $0x268] sm:$0xff] }
  0x5a   : > { %877 = vmatprep.subr.mxu0 %v410_v32  ;;  %1067 = vmatpush1.msra.mxu1 %v435_v12  ;;  %v331_v32 = vld [vmem:[%s1873_s17 + $0x260] sm:$0xff]  ;;  %v424_v44 = vld [vmem:[%s1878_s20 + $0x228] sm:$0xff]  ;;  %v282_v12 = vld [vmem:[%s1873_s17 + $0xd8] sm:$0xff] }
  0x5b   : > { %878 = vmatpush2.msra.mxu0 %v409_v33  ;;  %1068 = vmatprep.subr.mxu1 %v434_v20  ;;  %v429_v33 = vld [vmem:[%s1878_s20 + $0x250] sm:$0xff]  ;;  %v272_v50 = vld [vmem:[%s1873_s17 + $0x88] sm:$0xff]  ;;  %v451_v61 = vld [vmem:[%s1878_s20 + $0x300] sm:$0xff] }
  0x5c   : > { %1643 = vxpose.xlu0.b32.cont [12/16] %v1642_v1, 128  ;;  %879 = vmatprep.subr.mxu0 %v408_v35  ;;  %v396_v1 = vld [vmem:[%s1878_s20 + $0x148] sm:$0xff]  ;;  %v343_v7 = vld [vmem:[%s1873_s17 + $0x2c0] sm:$0xff]  ;;  %v286_v20 = vld [vmem:[%s1873_s17 + $0xf8] sm:$0xff] }
  0x5d   : > { %880 = vmatpush2.msra.mxu0 %v407_v39  ;;  %1069 = vmatpush1.msra.mxu1 %v433_v22  ;;  %v300_v35 = vld [vmem:[%s1873_s17 + $0x168] sm:$0xff] }
  0x5e   : > { %881 = vmatprep.subr.mxu0 %v406_v42  ;;  %1070 = vmatprep.subr.mxu1 %v432_v28  ;;  %v1744_v39 = vpack.i.bf16 %v268_v34, %v300_v35  ;;  %v270_v42 = vld [vmem:[%s1873_s17 + $0x78] sm:$0xff]  ;;  %v304_v51 = vld [vmem:[%s1873_s17 + $0x188] sm:$0xff] }
  0x5f   : > { %882 = vmatpush2.msra.mxu0 %v405_v43  ;;  %1071 = vmatpush1.msra.mxu1 %v431_v29  ;;  %v302_v43 = vld [vmem:[%s1873_s17 + $0x178] sm:$0xff]  ;;  %v452_v60 = vld [vmem:[%s1878_s20 + $0x308] sm:$0xff] }
  0x60   : > { %1645 = vxpose.xlu0.b32.cont [13/16] %v1644_v8, 128  ;;  %883 = vmatprep.subr.mxu0 %v404_v45  ;;  %v394_v8 = vld [vmem:[%s1878_s20 + $0x138] sm:$0xff]  ;;  %v423_v45 = vld [vmem:[%s1878_s20 + $0x220] sm:$0xff]  ;;  %v276_v0 = vld [vmem:[%s1873_s17 + $0xa8] sm:$0xff] }
  0x61   : > { %884 = vmatpush2.msra.mxu0 %v403_v49  ;;  %1072 = vmatprep.subr.mxu1 %v430_v30  ;;  %v421_v49 = vld [vmem:[%s1878_s20 + $0x210] sm:$0xff] }
  0x62   : > { %885 = vmatprep.subr.mxu0 %v402_v52  ;;  %1073 = vmatpush1.msra.mxu1 %v429_v33  ;;  %v420_v52 = vld [vmem:[%s1878_s20 + $0x208] sm:$0xff] }
  0x63   : > { %886 = vmatpush2.msra.mxu0 %v401_v53  ;;  %1074 = vmatprep.subr.mxu1 %v428_v36  ;;  %v419_v53 = vld [vmem:[%s1878_s20 + $0x200] sm:$0xff] }
  0x64   : > { %1647 = vxpose.xlu0.b32.cont [14/16] %v1646_v16, 128  ;;  %887 = vmatprep.subr.mxu0 %v400_v55  ;;  %v264_v16 = vld [vmem:[%s1873_s17 + $0x48] sm:$0xff]  ;;  %v1748_v55 = vpack.i.bf16 %v272_v50, %v304_v51 }
  0x65   : > { %888 = vmatpush2.msra.mxu0 %v399_v59  ;;  %v1740_v23 = vpack.i.bf16 %v264_v16, %v296_v17  ;;  %v306_v59 = vld [vmem:[%s1873_s17 + $0x198] sm:$0xff]  ;;  %v284_v16 = vld [vmem:[%s1873_s17 + $0xe8] sm:$0xff] }
  0x66   : > { %889 = vmatprep.subr.mxu0 %v398_v62  ;;  %v316_v17 = vld [vmem:[%s1873_s17 + $0x1e8] sm:$0xff] }
  0x67   : > { %890 = vmatpush2.msra.mxu0 %v397_v63  ;;  %v339_v63 = vld [vmem:[%s1873_s17 + $0x2a0] sm:$0xff] }
  0x68   : > { %1649 = vxpose.xlu0.b32.cont [15/16] %v1648_v27, 128  ;;  %891 = vmatprep.subr.mxu0 %v396_v1  ;;  %v298_v27 = vld [vmem:[%s1873_s17 + $0x158] sm:$0xff]  ;;  %v308_v1 = vld [vmem:[%s1873_s17 + $0x1a8] sm:$0xff] }
  0x69   : > { %633 = vxpose.xlu1.b32.start [1/16] %v319_v38, 128  ;;  %892 = vmatpush2.msra.mxu0 %v395_v5  ;;  %v1742_v31 = vpack.i.bf16 %v266_v26, %v298_v27  ;;  %v426_v38 = vld [vmem:[%s1878_s20 + $0x238] sm:$0xff]  ;;  %v1752_v2 = vpack.i.bf16 %v276_v0, %v308_v1  ;;  %v320_v27 = vld [vmem:[%s1873_s17 + $0x208] sm:$0xff] }
  0x6a   : > { %893 = vmatprep.subr.mxu0 %v394_v8  ;;  %v310_v5 = vld [vmem:[%s1873_s17 + $0x1b8] sm:$0xff]  ;;  %v280_v8 = vld [vmem:[%s1873_s17 + $0xc8] sm:$0xff] }
  0x6b   : > { %894 = vmatpush2.msra.mxu0 %v393_v9  ;;  %v312_v9 = vld [vmem:[%s1873_s17 + $0x1c8] sm:$0xff] }
  0x6c   : > { %1651 = vxpose.xlu0.b32.end [16/16] %v1650_v37, 128  ;;  %895 = vmatprep.subr.mxu0 %v392_v11  ;;  %v427_v37 = vld [vmem:[%s1878_s20 + $0x240] sm:$0xff]  ;;  %v1756_v10 = vpack.i.bf16 %v280_v8, %v312_v9  ;;  %v345_v11 = vld [vmem:[%s1873_s17 + $0x2d0] sm:$0xff]  ;;  %v338_v8 = vld [vmem:[%s1873_s17 + $0x298] sm:$0xff] }
  0x6d   : > { %634 = vxpose.xlu1.b32.cont [2/16] %v321_v48, 128  ;;  %896 = vmatpush2.msra.mxu0 %v391_v15  ;;  %v335_v48 = vld [vmem:[%s1873_s17 + $0x280] sm:$0xff] }
  0x6e   : > { %897 = vmatprep.subr.mxu0 %v390_v18  ;;  %1075 = vmatpush1.msra.mxu1 %v427_v37  ;;  %v347_v15 = vld [vmem:[%s1873_s17 + $0x2e0] sm:$0xff]  ;;  %v1760_v18 = vpack.i.bf16 %v284_v16, %v316_v17  ;;  %v324_v37 = vld [vmem:[%s1873_s17 + $0x228] sm:$0xff] }
  0x6f   : > { %898 = vmatpush2.msra.mxu0 %v389_v19  ;;  %1076 = vmatprep.subr.mxu1 %v426_v38  ;;  %v349_v19 = vld [vmem:[%s1873_s17 + $0x2f0] sm:$0xff] }
  0x70   : > { %1733 = vxpose.xlu0.b32.start [1/16] (narrow) %v1732_v47, 72  ;;  %899 = vmatprep.subr.mxu0 %v388_v21  ;;  %v1746_v47 = vpack.i.bf16 %v270_v42, %v302_v43  ;;  %v318_v21 = vld [vmem:[%s1873_s17 + $0x1f8] sm:$0xff] }
  0x71   : > { %635 = vxpose.xlu1.b32.cont [3/16] %v323_v58, 128  ;;  %900 = vmatpush2.msra.mxu0 %v387_v25  ;;  %v274_v58 = vld [vmem:[%s1873_s17 + $0x98] sm:$0xff]  ;;  %v1762_v22 = vpack.i.bf16 %v286_v20, %v318_v21 }
  0x72   : > { %1077 = vmatpush1.msra.mxu1 %v425_v41  ;;  %v1750_v62 = vpack.i.bf16 %v274_v58, %v306_v59  ;;  %v354_v25 = vld [vmem:[%s1873_s17 + $0x318] sm:$0xff] }
  0x73   : > { %1078 = vmatprep.subr.mxu1 %v424_v44  ;;  %v326_v42 = vld [vmem:[%s1873_s17 + $0x238] sm:$0xff] }
  0x74   : > { %1735 = vxpose.xlu0.b32.cont [2/16] (narrow) %v1734_v57, 72  ;;  %1079 = vmatpush1.msra.mxu1 %v423_v45  ;;  %v453_v57 = vld [vmem:[%s1878_s20 + $0x310] sm:$0xff] }
  0x75   : > { %636 = vxpose.xlu1.b32.cont [4/16] %v325_v4, 128  ;;  %1080 = vmatprep.subr.mxu1 %v422_v46  ;;  %v278_v4 = vld [vmem:[%s1873_s17 + $0xb8] sm:$0xff] }
  0x76   : > { %1081 = vmatpush1.msra.mxu1 %v421_v49  ;;  %v1754_v6 = vpack.i.bf16 %v278_v4, %v310_v5 }
  0x77   : > { %1082 = vmatprep.subr.mxu1 %v420_v52  ;;  %v330_v52 = vld [vmem:[%s1873_s17 + $0x258] sm:$0xff] }
  0x78   : > { %1737 = vxpose.xlu0.b32.cont [3/16] (narrow) %v1736_v3, 72  ;;  %1083 = vmatpush1.msra.mxu1 %v419_v53  ;;  %v341_v3 = vld [vmem:[%s1873_s17 + $0x2b0] sm:$0xff] }
  0x79   : > { %637 = vxpose.xlu1.b32.cont [5/16] %v327_v14, 128  ;;  %1112 = vmatprep.subr.mxu1 %v454_v54 }
  0x7a   : > { %1113 = vmatpush2.msra.mxu1 %v453_v57  ;;  %v332_v57 = vld [vmem:[%s1873_s17 + $0x268] sm:$0xff] }
  0x7b   : > { %1114 = vmatprep.subr.mxu1 %v452_v60 }
  0x7c   : > { %1739 = vxpose.xlu0.b32.cont [4/16] (narrow) %v1738_v13, 72  ;;  %1115 = vmatpush2.msra.mxu1 %v451_v61  ;;  %v314_v13 = vld [vmem:[%s1873_s17 + $0x1d8] sm:$0xff] }
  0x7d   : > { %638 = vxpose.xlu1.b32.cont [6/16] %v329_v24, 128  ;;  %v1758_v14 = vpack.i.bf16 %v282_v12, %v314_v13  ;;  %v340_v13 = vld [vmem:[%s1873_s17 + $0x2a8] sm:$0xff] }
  0x80   : > { %1741 = vxpose.xlu0.b32.cont [5/16] (narrow) %v1740_v23, 72  ;;  %v352_v23 = vld [vmem:[%s1873_s17 + $0x308] sm:$0xff] }
  0x81   : > { %639 = vxpose.xlu1.b32.cont [7/16] %v331_v32, 128  ;;  %v322_v32 = vld [vmem:[%s1873_s17 + $0x218] sm:$0xff] }
  0x84   : > { %1743 = vxpose.xlu0.b32.cont [6/16] (narrow) %v1742_v31, 72 }
  0x85   : > { %640 = vxpose.xlu1.b32.cont [8/16] %v333_v40, 128 }
  0x88   : > { %1745 = vxpose.xlu0.b32.cont [7/16] (narrow) %v1744_v39, 72 }
  0x89   : > { %641 = vxpose.xlu1.b32.cont [9/16] %v335_v48, 128 }
  0x8c   : > { %1747 = vxpose.xlu0.b32.cont [8/16] (narrow) %v1746_v47, 72  ;;  %v328_v47 = vld [vmem:[%s1873_s17 + $0x248] sm:$0xff] }
  0x8d   : > { %642 = vxpose.xlu1.b32.cont [10/16] %v337_v56, 128 }
  0x90   : > { %1749 = vxpose.xlu0.b32.cont [9/16] (narrow) %v1748_v55, 72 }
  0x91   : > { %643 = vxpose.xlu1.b32.cont [11/16] %v339_v63, 128 }
  0x94   : > { %1751 = vxpose.xlu0.b32.cont [10/16] (narrow) %v1750_v62, 72  ;;  %v334_v62 = vld [vmem:[%s1873_s17 + $0x278] sm:$0xff] }
  0x95   : > { %644 = vxpose.xlu1.b32.cont [12/16] %v341_v3, 128  ;;  %v336_v3 = vld [vmem:[%s1873_s17 + $0x288] sm:$0xff] }
  0x98   : > { %1753 = vxpose.xlu0.b32.cont [11/16] (narrow) %v1752_v2, 72 }
  0x99   : > { %645 = vxpose.xlu1.b32.cont [13/16] %v343_v7, 128 }
  0x9c   : > { %1755 = vxpose.xlu0.b32.cont [12/16] (narrow) %v1754_v6, 72 }
  0x9d   : > { %646 = vxpose.xlu1.b32.cont [14/16] %v345_v11, 128 }
  0xa0   : > { %1757 = vxpose.xlu0.b32.cont [13/16] (narrow) %v1756_v10, 72 }
  0xa1   : > { %647 = vxpose.xlu1.b32.cont [15/16] %v347_v15, 128 }
  0xa4   : > { %1759 = vxpose.xlu0.b32.cont [14/16] (narrow) %v1758_v14, 72 }
  0xa5   : > { %648 = vxpose.xlu1.b32.end [16/16] %v349_v19, 128 }
  0xa8   : > { %1761 = vxpose.xlu0.b32.cont [15/16] (narrow) %v1760_v18, 72  ;;  %v713_v24 = vpop.trf.xlu1  ;;  %v342_v18 = vld [vmem:[%s1873_s17 + $0x2b8] sm:$0xff] }
  0xa9   : > { %1563 = vmatprep.mubr.msk.f32.mxu1 %vm761_vm1, %v713_v24  ;;  %729 = vxpose.xlu1.b32.start [1/2] (short) (narrow) %v352_v23, 72  ;;  %v344_v23 = vld [vmem:[%s1873_s17 + $0x2c8] sm:$0xff] }
  0xac   : > { %1763 = vxpose.xlu0.b32.end [16/16] (narrow) %v1762_v22, 72  ;;  %v1652_v26 = vpop.trf.xlu0  ;;  %v2092_v30 = vpop.trf.xlu1 }
  0xad   : > { %v1653_v28 = vunpack.i.l.bf16 %v1652_v26  ;;  %v1656_v29 = vunpack.i.h.bf16 %v1652_v26  ;;  %730 = vxpose.xlu1.b32.end [2/2] (short) (narrow) %v354_v25, 72 }
  0xaf   : > { %901 = vmatprep.mubr.f32.mxu0 %v1653_v28  ;;  %v346_v28 = vld [vmem:[%s1873_s17 + $0x2d8] sm:$0xff] }
  0xb0   : > { %665 = vxpose.xlu0.b32.start [1/16] (narrow) %v320_v27, 72  ;;  %v1657_v31 = vpop.trf.xlu0  ;;  %902 = vmatmul.mubr.f32.vlgmr.msra.gmra.mxu0 %v1656_v29  ;;  %v2095_v35 = vpop.trf.xlu1 }
  0xb1   : > { %v1658_v33 = vunpack.i.l.bf16 %v1657_v31  ;;  %v1661_v34 = vunpack.i.h.bf16 %v1657_v31 }
  0xb3   : > { %907 = vmatprep.mubr.f32.mxu0 %v1658_v33 }
  0xb4   : > { %666 = vxpose.xlu0.b32.cont [2/16] (narrow) %v322_v32, 72  ;;  %v1662_v36 = vpop.trf.xlu0  ;;  %908 = vmatmul.mubr.f32.gmra.mxu0 %v1661_v34  ;;  %v2098_v40 = vpop.trf.xlu1  ;;  %v348_v34 = vld [vmem:[%s1873_s17 + $0x2e8] sm:$0xff] }
  0xb5   : > { %v1663_v38 = vunpack.i.l.bf16 %v1662_v36  ;;  %v1666_v39 = vunpack.i.h.bf16 %v1662_v36 }
  0xb7   : > { %913 = vmatprep.mubr.f32.mxu0 %v1663_v38 }
  0xb8   : > { %667 = vxpose.xlu0.b32.cont [3/16] (narrow) %v324_v37, 72  ;;  %v1667_v41 = vpop.trf.xlu0  ;;  %914 = vmatmul.mubr.f32.gmra.mxu0 %v1666_v39  ;;  %v2101_v45 = vpop.trf.xlu1 }
  0xb9   : > { %v1668_v43 = vunpack.i.l.bf16 %v1667_v41  ;;  %v1671_v44 = vunpack.i.h.bf16 %v1667_v41  ;;  %v350_v41 = vld [vmem:[%s1873_s17 + $0x2f8] sm:$0xff] }
  0xbb   : > { %919 = vmatprep.mubr.f32.mxu0 %v1668_v43 }
  0xbc   : > { %668 = vxpose.xlu0.b32.cont [4/16] (narrow) %v326_v42, 72  ;;  %v1672_v46 = vpop.trf.xlu0  ;;  %920 = vmatmul.mubr.f32.gmra.mxu0 %v1671_v44  ;;  %v2104_v50 = vpop.trf.xlu1 }
  0xbd   : > { %v1673_v48 = vunpack.i.l.bf16 %v1672_v46  ;;  %v1676_v49 = vunpack.i.h.bf16 %v1672_v46 }
  0xbf   : > { %925 = vmatprep.mubr.f32.mxu0 %v1673_v48 }
  0xc0   : > { %669 = vxpose.xlu0.b32.cont [5/16] (narrow) %v328_v47, 72  ;;  %v1677_v51 = vpop.trf.xlu0  ;;  %926 = vmatmul.mubr.f32.gmra.mxu0 %v1676_v49  ;;  %v2107_v55 = vpop.trf.xlu1 }
  0xc1   : > { %v1678_v53 = vunpack.i.l.bf16 %v1677_v51  ;;  %v1681_v54 = vunpack.i.h.bf16 %v1677_v51 }
  0xc3   : > { %931 = vmatprep.mubr.f32.mxu0 %v1678_v53 }
  0xc4   : > { %670 = vxpose.xlu0.b32.cont [6/16] (narrow) %v330_v52, 72  ;;  %v1682_v56 = vpop.trf.xlu0  ;;  %932 = vmatmul.mubr.f32.gmra.mxu0 %v1681_v54  ;;  %v2110_v60 = vpop.trf.xlu1 }
  0xc5   : > { %v1683_v58 = vunpack.i.l.bf16 %v1682_v56  ;;  %v1686_v59 = vunpack.i.h.bf16 %v1682_v56 }
  0xc7   : > { %937 = vmatprep.mubr.f32.mxu0 %v1683_v58 }
  0xc8   : > { %671 = vxpose.xlu0.b32.cont [7/16] (narrow) %v332_v57, 72  ;;  %v1687_v61 = vpop.trf.xlu0  ;;  %938 = vmatmul.mubr.f32.gmra.mxu0 %v1686_v59  ;;  %v2113_v1 = vpop.trf.xlu1 }
  0xc9   : > { %v1688_v63 = vunpack.i.l.bf16 %v1687_v61  ;;  %v1691_v0 = vunpack.i.h.bf16 %v1687_v61 }
  0xcb   : > { %943 = vmatprep.mubr.f32.mxu0 %v1688_v63 }
  0xcc   : > { %672 = vxpose.xlu0.b32.cont [8/16] (narrow) %v334_v62, 72  ;;  %v1692_v2 = vpop.trf.xlu0  ;;  %944 = vmatmul.mubr.f32.gmra.mxu0 %v1691_v0  ;;  %v2116_v6 = vpop.trf.xlu1 }
  0xcd   : > { %v1693_v4 = vunpack.i.l.bf16 %v1692_v2  ;;  %v1696_v5 = vunpack.i.h.bf16 %v1692_v2 }
  0xcf   : > { %949 = vmatprep.mubr.f32.mxu0 %v1693_v4 }
  0xd0   : > { %673 = vxpose.xlu0.b32.cont [9/16] (narrow) %v336_v3, 72  ;;  %v1697_v7 = vpop.trf.xlu0  ;;  %950 = vmatmul.mubr.f32.gmra.mxu0 %v1696_v5  ;;  %v2119_v11 = vpop.trf.xlu1 }
  0xd1   : > { %v1698_v9 = vunpack.i.l.bf16 %v1697_v7  ;;  %v1701_v10 = vunpack.i.h.bf16 %v1697_v7 }
  0xd3   : > { %955 = vmatprep.mubr.f32.mxu0 %v1698_v9 }
  0xd4   : > { %674 = vxpose.xlu0.b32.cont [10/16] (narrow) %v338_v8, 72  ;;  %v1702_v12 = vpop.trf.xlu0  ;;  %956 = vmatmul.mubr.f32.gmra.mxu0 %v1701_v10  ;;  %v2122_v16 = vpop.trf.xlu1 }
  0xd5   : > { %v1703_v14 = vunpack.i.l.bf16 %v1702_v12  ;;  %v1706_v15 = vunpack.i.h.bf16 %v1702_v12 }
  0xd7   : > { %961 = vmatprep.mubr.f32.mxu0 %v1703_v14 }
  0xd8   : > { %675 = vxpose.xlu0.b32.cont [11/16] (narrow) %v340_v13, 72  ;;  %v1707_v17 = vpop.trf.xlu0  ;;  %962 = vmatmul.mubr.f32.gmra.mxu0 %v1706_v15  ;;  %v2125_v21 = vpop.trf.xlu1 }
  0xd9   : > { %v1708_v19 = vunpack.i.l.bf16 %v1707_v17  ;;  %v1711_v20 = vunpack.i.h.bf16 %v1707_v17 }
  0xdb   : > { %967 = vmatprep.mubr.f32.mxu0 %v1708_v19 }
  0xdc   : > { %676 = vxpose.xlu0.b32.cont [12/16] (narrow) %v342_v18, 72  ;;  %v1712_v22 = vpop.trf.xlu0  ;;  %968 = vmatmul.mubr.f32.gmra.mxu0 %v1711_v20  ;;  %v2128_v26 = vpop.trf.xlu1 }
  0xdd   : > { %v1713_v24 = vunpack.i.l.bf16 %v1712_v22  ;;  %v1716_v25 = vunpack.i.h.bf16 %v1712_v22 }
  0xdf   : > { %973 = vmatprep.mubr.f32.mxu0 %v1713_v24 }
  0xe0   : > { %677 = vxpose.xlu0.b32.cont [13/16] (narrow) %v344_v23, 72  ;;  %v1717_v27 = vpop.trf.xlu0  ;;  %974 = vmatmul.mubr.f32.gmra.mxu0 %v1716_v25  ;;  %v2131_v32 = vpop.trf.xlu1 }
  0xe1   : > { %v1718_v29 = vunpack.i.l.bf16 %v1717_v27  ;;  %v1721_v31 = vunpack.i.h.bf16 %v1717_v27 }
  0xe3   : > { %979 = vmatprep.mubr.f32.mxu0 %v1718_v29 }
  0xe4   : > { %678 = vxpose.xlu0.b32.cont [14/16] (narrow) %v346_v28, 72  ;;  %v1722_v33 = vpop.trf.xlu0  ;;  %980 = vmatmul.mubr.f32.gmra.mxu0 %v1721_v31  ;;  %v2134_v38 = vpop.trf.xlu1 }
  0xe5   : > { %v1723_v36 = vunpack.i.l.bf16 %v1722_v33  ;;  %v1726_v37 = vunpack.i.h.bf16 %v1722_v33 }
  0xe7   : > { %985 = vmatprep.mubr.f32.mxu0 %v1723_v36 }
  0xe8   : > { %679 = vxpose.xlu0.b32.cont [15/16] (narrow) %v348_v34, 72  ;;  %v1727_v39 = vpop.trf.xlu0  ;;  %986 = vmatmul.mubr.f32.gmra.mxu0 %v1726_v37  ;;  %v649_v44 = vpop.trf.xlu1 }
  0xe9   : > { %v1728_v42 = vunpack.i.l.bf16 %v1727_v39  ;;  %v1731_v43 = vunpack.i.h.bf16 %v1727_v39  ;;  %1117 = vmatmul.mubr.f32.vlgmr.msra.gmra.mxu1 %v649_v44 }
  0xea   : > { %1564 = vmatprep.mubr.msk.f32.mxu1 %vm761_vm1, %v2092_v30 }
  0xeb   : > { %991 = vmatprep.mubr.f32.mxu0 %v1728_v42 }
  0xec   : > { %680 = vxpose.xlu0.b32.end [16/16] (narrow) %v350_v41, 72  ;;  %v1764_v46 = vpop.trf.xlu0  ;;  %992 = vmatmul.mubr.f32.gmra.mxu0 %v1731_v43  ;;  %v650_v49 = vpop.trf.xlu1 }
  0xed   : > { %v1765_v47 = vunpack.i.l.bf16 %v1764_v46  ;;  %v1768_v48 = vunpack.i.h.bf16 %v1764_v46  ;;  %1123 = vmatmul.mubr.f32.gmra.mxu1 %v650_v49 }
  0xee   : > { %1565 = vmatprep.mubr.msk.f32.mxu1 %vm761_vm1, %v2095_v35 }
  0xef   : > { %997 = vmatprep.mubr.f32.mxu0 %v1765_v47 }
  0xf0   : > { %v1769_v51 = vpop.trf.xlu0  ;;  %998 = vmatmul.mubr.f32.gmra.mxu0 %v1768_v48  ;;  %v651_v54 = vpop.trf.xlu1 }
  0xf1   : > { %v1770_v52 = vunpack.i.l.bf16 %v1769_v51  ;;  %v1773_v53 = vunpack.i.h.bf16 %v1769_v51  ;;  %1129 = vmatmul.mubr.f32.gmra.mxu1 %v651_v54 }
  0xf2   : > { %1566 = vmatprep.mubr.msk.f32.mxu1 %vm761_vm1, %v2098_v40 }
  0xf3   : > { %1003 = vmatprep.mubr.f32.mxu0 %v1770_v52 }
  0xf4   : > { %v1774_v30 = vpop.trf.xlu0  ;;  %1004 = vmatmul.mubr.f32.gmra.mxu0 %v1773_v53  ;;  %v652_v58 = vpop.trf.xlu1 }
  0xf5   : > { %v1775_v56 = vunpack.i.l.bf16 %v1774_v30  ;;  %v1778_v57 = vunpack.i.h.bf16 %v1774_v30  ;;  %1135 = vmatmul.mubr.f32.gmra.mxu1 %v652_v58 }
  0xf6   : > { %1567 = vmatprep.mubr.msk.f32.mxu1 %vm761_vm1, %v2101_v45 }
  0xf7   : > { %1009 = vmatprep.mubr.f32.mxu0 %v1775_v56 }
  0xf8   : > { %v1779_v35 = vpop.trf.xlu0  ;;  %1010 = vmatmul.mubr.f32.gmra.mxu0 %v1778_v57  ;;  %v653_v62 = vpop.trf.xlu1 }
  0xf9   : > { %v1780_v59 = vunpack.i.l.bf16 %v1779_v35  ;;  %v1783_v61 = vunpack.i.h.bf16 %v1779_v35  ;;  %1141 = vmatmul.mubr.f32.gmra.mxu1 %v653_v62 }
  0xfa   : > { %1568 = vmatprep.mubr.msk.f32.mxu1 %vm761_vm1, %v2104_v50 }
  0xfb   : > { %1015 = vmatprep.mubr.f32.mxu0 %v1780_v59 }
  0xfc   : > { %v1784_v40 = vpop.trf.xlu0  ;;  %1016 = vmatmul.mubr.f32.gmra.mxu0 %v1783_v61  ;;  %v654_v2 = vpop.trf.xlu1 }
  0xfd   : > { %v1785_v63 = vunpack.i.l.bf16 %v1784_v40  ;;  %v1788_v0 = vunpack.i.h.bf16 %v1784_v40  ;;  %1147 = vmatmul.mubr.f32.gmra.mxu1 %v654_v2 }
  0xfe   : > { %1569 = vmatprep.mubr.msk.f32.mxu1 %vm761_vm1, %v2107_v55 }
  0xff   : > { %1021 = vmatprep.mubr.f32.mxu0 %v1785_v63 }
 0x100   : > { %v1789_v45 = vpop.trf.xlu0  ;;  %1022 = vmatmul.mubr.f32.gmra.mxu0 %v1788_v0  ;;  %v655_v5 = vpop.trf.xlu1 }
 0x101   : > { %v1790_v3 = vunpack.i.l.bf16 %v1789_v45  ;;  %v1793_v4 = vunpack.i.h.bf16 %v1789_v45  ;;  %1153 = vmatmul.mubr.f32.gmra.mxu1 %v655_v5  ;;  %v455_v45 = vld [vmem:[#allocation2] sm:$0xff] }
 0x102   : > { %1570 = vmatprep.mubr.msk.f32.mxu1 %vm761_vm1, %v2110_v60 }
 0x103   : > { %1027 = vmatprep.mubr.f32.mxu0 %v1790_v3 }
 0x104   : > { %v1794_v50 = vpop.trf.xlu0  ;;  %1028 = vmatmul.mubr.f32.gmra.mxu0 %v1793_v4  ;;  %v656_v9 = vpop.trf.xlu1 }
 0x105   : > { %v1795_v7 = vunpack.i.l.bf16 %v1794_v50  ;;  %v1798_v8 = vunpack.i.h.bf16 %v1794_v50  ;;  %1159 = vmatmul.mubr.f32.gmra.mxu1 %v656_v9  ;;  %v456_v50 = vld [vmem:[#allocation2 + $0x8] sm:$0xff] }
 0x106   : > { %1571 = vmatprep.mubr.msk.f32.mxu1 %vm761_vm1, %v2113_v1 }
 0x107   : > { %1033 = vmatprep.mubr.f32.mxu0 %v1795_v7 }
 0x108   : > { %v1799_v55 = vpop.trf.xlu0  ;;  %1034 = vmatmul.mubr.f32.gmra.mxu0 %v1798_v8  ;;  %v657_v13 = vpop.trf.xlu1 }
 0x109   : > { %v1800_v10 = vunpack.i.l.bf16 %v1799_v55  ;;  %v1803_v12 = vunpack.i.h.bf16 %v1799_v55  ;;  %1165 = vmatmul.mubr.f32.gmra.mxu1 %v657_v13  ;;  %v457_v55 = vld [vmem:[#allocation2 + $0x10] sm:$0xff] }
 0x10a   : > { %1572 = vmatprep.mubr.msk.f32.mxu1 %vm761_vm1, %v2116_v6 }
 0x10b   : > { %1039 = vmatprep.mubr.f32.mxu0 %v1800_v10 }
 0x10c   : > { %v1804_v60 = vpop.trf.xlu0  ;;  %1040 = vmatmul.mubr.f32.gmra.mxu0 %v1803_v12  ;;  %v658_v17 = vpop.trf.xlu1 }
 0x10d   : > { %v1805_v14 = vunpack.i.l.bf16 %v1804_v60  ;;  %v1808_v15 = vunpack.i.h.bf16 %v1804_v60  ;;  %1171 = vmatmul.mubr.f32.gmra.mxu1 %v658_v17 }
 0x10e   : > { %1573 = vmatprep.mubr.msk.f32.mxu1 %vm761_vm1, %v2119_v11 }
 0x10f   : > { %1045 = vmatprep.mubr.f32.mxu0 %v1805_v14  ;;  %v458_v14 = vld [vmem:[#allocation2 + $0x18] sm:$0xff] }
 0x110   : > { %1046 = vmatmul.mubr.f32.gmra.mxu0 %v1808_v15  ;;  %v659_v1 = vpop.trf.xlu1 }
 0x111   : > { %1177 = vmatmul.mubr.f32.gmra.mxu1 %v659_v1 }
 0x112   : > { %1574 = vmatprep.mubr.msk.f32.mxu1 %vm761_vm1, %v2122_v16 }
 0x114   : > { %v660_v18 = vpop.trf.xlu1 }
 0x115   : > { %1183 = vmatmul.mubr.f32.gmra.mxu1 %v660_v18  ;;  %v459_v18 = vld [vmem:[#allocation2 + $0x20] sm:$0xff] }
 0x116   : > { %1575 = vmatprep.mubr.msk.f32.mxu1 %vm761_vm1, %v2125_v21 }
 0x118   : > { %v661_v6 = vpop.trf.xlu1 }
 0x119   : > { %1189 = vmatmul.mubr.f32.gmra.mxu1 %v661_v6 }
 0x11a   : > { %1576 = vmatprep.mubr.msk.f32.mxu1 %vm761_vm1, %v2128_v26 }
 0x11c   : > { %v662_v19 = vpop.trf.xlu1 }
 0x11d   : > { %1195 = vmatmul.mubr.f32.gmra.mxu1 %v662_v19 }
 0x11e   : > { %1577 = vmatprep.mubr.msk.f32.mxu1 %vm761_vm1, %v2131_v32 }
 0x120   : > { %v663_v11 = vpop.trf.xlu1 }
 0x121   : > { %1201 = vmatmul.mubr.f32.gmra.mxu1 %v663_v11 }
 0x122   : > { %1578 = vmatprep.mubr.msk.f32.mxu1 %vm761_vm1, %v2134_v38 }
 0x124   : > { %v664_v16 = vpop.trf.xlu1 }
 0x125   : > { %1207 = vmatmul.mubr.f32.gmra.mxu1 %v664_v16 }
 0x128   : > { %v745_v20 = vpop.trf.xlu1 }
 0x129   : > { %1579 = vmatprep.mubr.msk.f32.mxu1 %vm761_vm1, %v745_v20  ;;  %v460_v20 = vld [vmem:[#allocation2 + $0x28] sm:$0xff] }
 0x12c   : > { %v681_v21 = vpop.trf.xlu0  ;;  %v746_v22 = vpop.trf.xlu1 }
 0x12d   : > { %1213 = vmatmul.mubr.f32.gmra.mxu1 %v681_v21 }
 0x12e   : > { %1580 = vmatprep.mubr.msk.f32.mxu1 %vm761_vm1, %v746_v22 }
 0x130   : > { %v682_v23 = vpop.trf.xlu0  ;;  %v747_v24 = vpop.trf.xlu1 }
 0x131   : > { %1219 = vmatmul.mubr.f32.gmra.mxu1 %v682_v23 }
 0x132   : > { %1581 = vmatprep.mubr.msk.f32.mxu1 %vm761_vm1, %v747_v24  ;;  %v461_v24 = vld [vmem:[#allocation2 + $0x30] sm:$0xff] }
 0x134   : > { %v683_v25 = vpop.trf.xlu0  ;;  %v748_v26 = vpop.trf.xlu1 }
 0x135   : > { %1225 = vmatmul.mubr.f32.gmra.mxu1 %v683_v25 }
 0x136   : > { %1582 = vmatprep.mubr.msk.f32.mxu1 %vm761_vm1, %v748_v26 }
 0x138   : > { %v684_v27 = vpop.trf.xlu0  ;;  %v749_v28 = vpop.trf.xlu1 }
 0x139   : > { %1231 = vmatmul.mubr.f32.gmra.mxu1 %v684_v27 }
 0x13a   : > { %1583 = vmatprep.mubr.msk.f32.mxu1 %vm761_vm1, %v749_v28 }
 0x13c   : > { %v685_v29 = vpop.trf.xlu0  ;;  %v750_v31 = vpop.trf.xlu1 }
 0x13d   : > { %1237 = vmatmul.mubr.f32.gmra.mxu1 %v685_v29  ;;  %v462_v29 = vld [vmem:[#allocation2 + $0x38] sm:$0xff] }
 0x13e   : > { %1584 = vmatprep.mubr.msk.f32.mxu1 %vm761_vm1, %v750_v31 }
 0x140   : > { %v686_v32 = vpop.trf.xlu0  ;;  %v751_v33 = vpop.trf.xlu1 }
 0x141   : > { %1243 = vmatmul.mubr.f32.gmra.mxu1 %v686_v32 }
 0x142   : > { %1585 = vmatprep.mubr.msk.f32.mxu1 %vm761_vm1, %v751_v33 }
 0x144   : > { %v687_v34 = vpop.trf.xlu0  ;;  %v752_v36 = vpop.trf.xlu1 }
 0x145   : > { %1249 = vmatmul.mubr.f32.gmra.mxu1 %v687_v34  ;;  %v463_v34 = vld [vmem:[#allocation2 + $0x40] sm:$0xff] }
 0x146   : > { %1586 = vmatprep.mubr.msk.f32.mxu1 %vm761_vm1, %v752_v36 }
 0x148   : > { %v688_v37 = vpop.trf.xlu0  ;;  %v753_v38 = vpop.trf.xlu1 }
 0x149   : > { %1255 = vmatmul.mubr.f32.gmra.mxu1 %v688_v37 }
 0x14a   : > { %1587 = vmatprep.mubr.msk.f32.mxu1 %vm761_vm1, %v753_v38 }
 0x14c   : > { %v689_v39 = vpop.trf.xlu0 }
 0x14d   : > { %1261 = vmatmul.mubr.f32.gmra.mxu1 %v689_v39 }
 0x170   : > { %v903_v41 = vpop.f32.mrf.mxu0 }
 0x172   : > { %v905_v42 = vpop.f32.mrf.mxu0 }
 0x174   : > { %v909_v43 = vpop.f32.mrf.mxu0 }
 0x176   : > { %v911_v44 = vpop.f32.mrf.mxu0 }
 0x178   : > { %v915_v46 = vpop.f32.mrf.mxu0 }
 0x17a   : > { %v917_v47 = vpop.f32.mrf.mxu0 }
 0x17c   : > { %v921_v48 = vpop.f32.mrf.mxu0 }
 0x17e   : > { %v923_v49 = vpop.f32.mrf.mxu0 }
 0x180   : > { %v2176_v51 = vpop.f32.mrf.mxu0 }
 0x182   : > { %v2178_v52 = vpop.f32.mrf.mxu0 }
 0x184   : > { %v2180_v53 = vpop.f32.mrf.mxu0 }
 0x186   : > { %v2182_v54 = vpop.f32.mrf.mxu0 }
 0x188   : > { %v2184_v30 = vpop.f32.mrf.mxu0 }
 0x18a   : > { %v2186_v56 = vpop.f32.mrf.mxu0 }
 0x18c   : > { %v2188_v57 = vpop.f32.mrf.mxu0 }
 0x18e   : > { %v2190_v58 = vpop.f32.mrf.mxu0 }
 0x190   : > { %v2192_v35 = vpop.f32.mrf.mxu0 }
 0x192   : > { %v2194_v59 = vpop.f32.mrf.mxu0 }
 0x194   : > { %v2196_v61 = vpop.f32.mrf.mxu0 }
 0x196   : > { %v2198_v62 = vpop.f32.mrf.mxu0 }
 0x198   : > { %v2200_v40 = vpop.f32.mrf.mxu0 }
 0x19a   : > { %v2202_v63 = vpop.f32.mrf.mxu0 }
 0x19c   : > { %v2204_v0 = vpop.f32.mrf.mxu0 }
 0x19e   : > { %v2206_v2 = vpop.f32.mrf.mxu0 }
 0x1a0   : > { %v2208_v4 = vpop.f32.mrf.mxu0 }
 0x1a2   : > { %v2210_v12 = vpop.f32.mrf.mxu0 }
 0x1a4   : > { %v2213_v19 = vpop.f32.mrf.mxu0 }
 0x1a6   : > { %v2216_v26 = vpop.f32.mrf.mxu0 }
 0x1a8   : > { %v2219_v37 = vpop.f32.mrf.mxu0 }
 0x1a9   : > { %v1118_v3 = vpop.f32.mrf.mxu1 }
 0x1aa   : > { %v1119_v5 = vadd.f32 %v1118_v3, %v903_v41  ;;  %v464_v41 = vld [vmem:[#allocation2 + $0x48] sm:$0xff]  ;;  %v466_v3 = vld [vmem:[#allocation2 + $0x58] sm:$0xff] }
 0x1ab   : > { %v1120_v7 = vpop.f32.mrf.mxu1 }
 0x1ac   : > { %v1267_v8 = vadd.f32 %v1119_v5, %v455_v45  ;;  %v1121_v9 = vadd.f32 %v1120_v7, %v905_v42  ;;  %v467_v7 = vld [vmem:[#allocation2 + $0x60] sm:$0xff] }
 0x1ad   : > { %v1124_v10 = vpop.f32.mrf.mxu1 }
 0x1ae   : > { %1317 = vst [vmem:[#allocation2] sm:$0xff] %v1267_v8  ;;  %v1268_v13 = vadd.f32 %v1121_v9, %v456_v50  ;;  %v1125_v60 = vadd.f32 %v1124_v10, %v909_v43  ;;  %v468_v10 = vld [vmem:[#allocation2 + $0x68] sm:$0xff] }
 0x1af   : > { %v1126_v15 = vpop.f32.mrf.mxu1 }
 0x1b0   : > { %1319 = vst.msk [vmem:[#allocation2 + $0x8] sm:$0xff] %vm1318_vm2, %v1268_v13  ;;  %v1269_v17 = vadd.f32 %v1125_v60, %v457_v55  ;;  %v1127_v1 = vadd.f32 %v1126_v15, %v911_v44  ;;  %v469_v15 = vld [vmem:[#allocation2 + $0x70] sm:$0xff] }
 0x1b1   : > { %v1130_v6 = vpop.f32.mrf.mxu1 }
 0x1b2   : > { %1320 = vst [vmem:[#allocation2 + $0x10] sm:$0xff] %v1269_v17  ;;  %v1270_v11 = vadd.f32 %v1127_v1, %v458_v14  ;;  %v1131_v16 = vadd.f32 %v1130_v6, %v915_v46  ;;  %v465_v46 = vld [vmem:[#allocation2 + $0x50] sm:$0xff] }
 0x1b3   : > { %v1132_v21 = vpop.f32.mrf.mxu1 }
 0x1b4   : > { %1321 = vst.msk [vmem:[#allocation2 + $0x18] sm:$0xff] %vm1318_vm2, %v1270_v11  ;;  %v1271_v22 = vadd.f32 %v1131_v16, %v459_v18  ;;  %v1133_v23 = vadd.f32 %v1132_v21, %v917_v47  ;;  %v470_v18 = vld [vmem:[#allocation2 + $0x78] sm:$0xff] }
 0x1b5   : > { %v1136_v25 = vpop.f32.mrf.mxu1 }
 0x1b6   : > { %1322 = vst [vmem:[#allocation2 + $0x20] sm:$0xff] %v1271_v22  ;;  %v1272_v27 = vadd.f32 %v1133_v23, %v460_v20  ;;  %v1137_v28 = vadd.f32 %v1136_v25, %v921_v48  ;;  %v2224_v48 = vpop.f32.mrf.mxu0  ;;  %v471_v20 = vld [vmem:[#allocation2 + $0x80] sm:$0xff]  ;;  %v472_v23 = vld [vmem:[#allocation2 + $0x88] sm:$0xff] }
 0x1b7   : > { %v1138_v31 = vpop.f32.mrf.mxu1 }
 0x1b8   : > { %1323 = vst.msk [vmem:[#allocation2 + $0x28] sm:$0xff] %vm1318_vm2, %v1272_v27  ;;  %v1273_v32 = vadd.f32 %v1137_v28, %v461_v24  ;;  %v1139_v33 = vadd.f32 %v1138_v31, %v923_v49  ;;  %v2229_v9 = vpop.f32.mrf.mxu0  ;;  %v473_v28 = vld [vmem:[#allocation2 + $0x90] sm:$0xff] }
 0x1b9   : > { %v1142_v36 = vpop.f32.mrf.mxu1 }
 0x1ba   : > { %1324 = vst [vmem:[#allocation2 + $0x30] sm:$0xff] %v1273_v32  ;;  %v1274_v38 = vadd.f32 %v1139_v33, %v462_v29  ;;  %v1143_v39 = vadd.f32 %v1142_v36, %v2176_v51  ;;  %v2234_v14 = vpop.f32.mrf.mxu0  ;;  %v474_v32 = vld [vmem:[#allocation2 + $0x98] sm:$0xff] }
 0x1bb   : > { %v1144_v42 = vpop.f32.mrf.mxu1 }
 0x1bc   : > { %1325 = vst.msk [vmem:[#allocation2 + $0x38] sm:$0xff] %vm1318_vm2, %v1274_v38  ;;  %v1275_v43 = vadd.f32 %v1143_v39, %v463_v34  ;;  %v1145_v44 = vadd.f32 %v1144_v42, %v2178_v52  ;;  %v2239_v16 = vpop.f32.mrf.mxu0  ;;  %v475_v38 = vld [vmem:[#allocation2 + $0xa0] sm:$0xff]  ;;  %v476_v42 = vld [vmem:[#allocation2 + $0xa8] sm:$0xff] }
 0x1bd   : > { %v1148_v47 = vpop.f32.mrf.mxu1 }
 0x1be   : > { %1326 = vst [vmem:[#allocation2 + $0x40] sm:$0xff] %v1275_v43  ;;  %v1276_v49 = vadd.f32 %v1145_v44, %v464_v41  ;;  %v1149_v45 = vadd.f32 %v1148_v47, %v2180_v53  ;;  %v2244_v27 = vpop.f32.mrf.mxu0  ;;  %v477_v47 = vld [vmem:[#allocation2 + $0xb0] sm:$0xff] }
 0x1bf   : > { %v1150_v5 = vpop.f32.mrf.mxu1 }
 0x1c0   : > { %1327 = vst.msk [vmem:[#allocation2 + $0x48] sm:$0xff] %vm1318_vm2, %v1276_v49  ;;  %v1277_v51 = vadd.f32 %v1149_v45, %v465_v46  ;;  %v1151_v50 = vadd.f32 %v1150_v5, %v2182_v54  ;;  %v2249_v36 = vpop.f32.mrf.mxu0 }
 0x1c1   : > { %v1154_v8 = vpop.f32.mrf.mxu1 }
 0x1c2   : > { %1328 = vst [vmem:[#allocation2 + $0x50] sm:$0xff] %v1277_v51  ;;  %v1278_v52 = vadd.f32 %v1151_v50, %v466_v3  ;;  %v1155_v55 = vadd.f32 %v1154_v8, %v2184_v30  ;;  %v2254_v46 = vpop.f32.mrf.mxu0  ;;  %v478_v3 = vld [vmem:[#allocation2 + $0xb8] sm:$0xff] }
 0x1c3   : > { %v1156_v13 = vpop.f32.mrf.mxu1 }
 0x1c4   : > { %1329 = vst.msk [vmem:[#allocation2 + $0x58] sm:$0xff] %vm1318_vm2, %v1278_v52  ;;  %v1279_v53 = vadd.f32 %v1155_v55, %v467_v7  ;;  %v1157_v60 = vadd.f32 %v1156_v13, %v2186_v56  ;;  %v2259_v50 = vpop.f32.mrf.mxu0  ;;  %v479_v7 = vld [vmem:[#allocation2 + $0xc0] sm:$0xff]  ;;  %v480_v55 = vld [vmem:[#allocation2 + $0xc8] sm:$0xff] }
 0x1c5   : > { %v1160_v17 = vpop.f32.mrf.mxu1 }
 0x1c6   : > { %1330 = vst [vmem:[#allocation2 + $0x60] sm:$0xff] %v1279_v53  ;;  %v1280_v54 = vadd.f32 %v1157_v60, %v468_v10  ;;  %v1161_v1 = vadd.f32 %v1160_v17, %v2188_v57  ;;  %v2264_v53 = vpop.f32.mrf.mxu0  ;;  %v481_v60 = vld [vmem:[#allocation2 + $0xd0] sm:$0xff] }
 0x1c7   : > { %v1162_v6 = vpop.f32.mrf.mxu1 }
 0x1c8   : > { %1331 = vst.msk [vmem:[#allocation2 + $0x68] sm:$0xff] %vm1318_vm2, %v1280_v54  ;;  %v1281_v30 = vadd.f32 %v1161_v1, %v469_v15  ;;  %v1163_v11 = vadd.f32 %v1162_v6, %v2190_v58  ;;  %v482_v54 = vld [vmem:[#allocation2 + $0xd8] sm:$0xff]  ;;  %v1017_v6 = vpop.f32.mrf.mxu0 }
 0x1c9   : > { %v1166_v21 = vpop.f32.mrf.mxu1 }
 0x1ca   : > { %1332 = vst [vmem:[#allocation2 + $0x70] sm:$0xff] %v1281_v30  ;;  %v1282_v56 = vadd.f32 %v1163_v11, %v470_v18  ;;  %v1167_v22 = vadd.f32 %v1166_v21, %v2192_v35  ;;  %v483_v30 = vld [vmem:[#allocation2 + $0xe0] sm:$0xff]  ;;  %v484_v21 = vld [vmem:[#allocation2 + $0xe8] sm:$0xff] }
 0x1cb   : > { %v1168_v24 = vpop.f32.mrf.mxu1 }
 0x1cc   : > { %1333 = vst.msk [vmem:[#allocation2 + $0x78] sm:$0xff] %vm1318_vm2, %v1282_v56  ;;  %v1283_v57 = vadd.f32 %v1167_v22, %v471_v20  ;;  %v1169_v25 = vadd.f32 %v1168_v24, %v2194_v59  ;;  %v485_v24 = vld [vmem:[#allocation2 + $0xf0] sm:$0xff] }
 0x1cd   : > { %v1172_v29 = vpop.f32.mrf.mxu1 }
 0x1ce   : > { %1334 = vst [vmem:[#allocation2 + $0x80] sm:$0xff] %v1283_v57  ;;  %v1284_v58 = vadd.f32 %v1169_v25, %v472_v23  ;;  %v1173_v31 = vadd.f32 %v1172_v29, %v2196_v61  ;;  %v1019_v23 = vpop.f32.mrf.mxu0 }
 0x1cf   : > { %v1174_v33 = vpop.f32.mrf.mxu1 }
 0x1d0   : > { %1335 = vst.msk [vmem:[#allocation2 + $0x88] sm:$0xff] %vm1318_vm2, %v1284_v58  ;;  %v1285_v35 = vadd.f32 %v1173_v31, %v473_v28  ;;  %v1175_v34 = vadd.f32 %v1174_v33, %v2198_v62  ;;  %v486_v28 = vld [vmem:[#allocation2 + $0xf8] sm:$0xff]  ;;  %v1023_v31 = vpop.f32.mrf.mxu0  ;;  %v487_v33 = vld [vmem:[#allocation2 + $0x100] sm:$0xff] }
 0x1d1   : > { %v1178_v39 = vpop.f32.mrf.mxu1 }
 0x1d2   : > { %1336 = vst [vmem:[#allocation2 + $0x90] sm:$0xff] %v1285_v35  ;;  %v1286_v59 = vadd.f32 %v1175_v34, %v474_v32  ;;  %v1179_v41 = vadd.f32 %v1178_v39, %v2200_v40  ;;  %v1025_v34 = vpop.f32.mrf.mxu0 }
 0x1d3   : > { %v1180_v43 = vpop.f32.mrf.mxu1 }
 0x1d4   : > { %1337 = vst.msk [vmem:[#allocation2 + $0x98] sm:$0xff] %vm1318_vm2, %v1286_v59  ;;  %v1287_v61 = vadd.f32 %v1179_v41, %v475_v38  ;;  %v1181_v44 = vadd.f32 %v1180_v43, %v2202_v63  ;;  %v488_v38 = vld [vmem:[#allocation2 + $0x108] sm:$0xff]  ;;  %v489_v41 = vld [vmem:[#allocation2 + $0x110] sm:$0xff] }
 0x1d5   : > { %v1184_v49 = vpop.f32.mrf.mxu1 }
 0x1d6   : > { %1338 = vst [vmem:[#allocation2 + $0xa0] sm:$0xff] %v1287_v61  ;;  %v1288_v62 = vadd.f32 %v1181_v44, %v476_v42  ;;  %v1185_v45 = vadd.f32 %v1184_v49, %v2204_v0  ;;  %v1029_v61 = vpop.f32.mrf.mxu0  ;;  %v490_v44 = vld [vmem:[#allocation2 + $0x118] sm:$0xff] }
 0x1d7   : > { %v1186_v5 = vpop.f32.mrf.mxu1 }
 0x1d8   : > { %1339 = vst.msk [vmem:[#allocation2 + $0xa8] sm:$0xff] %vm1318_vm2, %v1288_v62  ;;  %v1289_v40 = vadd.f32 %v1185_v45, %v477_v47  ;;  %v1187_v51 = vadd.f32 %v1186_v5, %v2206_v2  ;;  %v491_v62 = vld [vmem:[#allocation2 + $0x120] sm:$0xff]  ;;  %v1031_v5 = vpop.f32.mrf.mxu0 }
 0x1d9   : > { %v1190_v8 = vpop.f32.mrf.mxu1 }
 0x1da   : > { %1340 = vst [vmem:[#allocation2 + $0xb0] sm:$0xff] %v1289_v40  ;;  %v1290_v63 = vadd.f32 %v1187_v51, %v478_v3  ;;  %v1191_v52 = vadd.f32 %v1190_v8, %v2208_v4  ;;  %v492_v40 = vld [vmem:[#allocation2 + $0x128] sm:$0xff]  ;;  %v493_v8 = vld [vmem:[#allocation2 + $0x130] sm:$0xff] }
 0x1db   : > { %v1192_v10 = vpop.f32.mrf.mxu1 }
 0x1dc   : > { %1341 = vst.msk [vmem:[#allocation2 + $0xb8] sm:$0xff] %vm1318_vm2, %v1290_v63  ;;  %v1291_v0 = vadd.f32 %v1191_v52, %v479_v7  ;;  %v1193_v13 = vadd.f32 %v1192_v10, %v2210_v12  ;;  %v494_v10 = vld [vmem:[#allocation2 + $0x138] sm:$0xff] }
 0x1dd   : > { %v1196_v15 = vpop.f32.mrf.mxu1 }
 0x1de   : > { %1342 = vst [vmem:[#allocation2 + $0xc0] sm:$0xff] %v1291_v0  ;;  %v1292_v2 = vadd.f32 %v1193_v13, %v480_v55  ;;  %v1197_v17 = vadd.f32 %v1196_v15, %v2213_v19 }
 0x1df   : > { %v1198_v1 = vpop.f32.mrf.mxu1 }
 0x1e0   : > { %1343 = vst.msk [vmem:[#allocation2 + $0xc8] sm:$0xff] %vm1318_vm2, %v1292_v2  ;;  %v1293_v4 = vadd.f32 %v1197_v17, %v481_v60  ;;  %v1199_v18 = vadd.f32 %v1198_v1, %v2216_v26  ;;  %v495_v60 = vld [vmem:[#allocation2 + $0x140] sm:$0xff]  ;;  %v496_v1 = vld [vmem:[#allocation2 + $0x148] sm:$0xff] }
 0x1e1   : > { %v1202_v11 = vpop.f32.mrf.mxu1 }
 0x1e2   : > { %1344 = vst [vmem:[#allocation2 + $0xd0] sm:$0xff] %v1293_v4  ;;  %v1294_v12 = vadd.f32 %v1199_v18, %v482_v54  ;;  %v1203_v20 = vadd.f32 %v1202_v11, %v2219_v37 }
 0x1e3   : > { %v1204_v56 = vpop.f32.mrf.mxu1 }
 0x1e4   : > { %1345 = vst.msk [vmem:[#allocation2 + $0xd8] sm:$0xff] %vm1318_vm2, %v1294_v12  ;;  %v1295_v22 = vadd.f32 %v1203_v20, %v483_v30  ;;  %v1205_v19 = vadd.f32 %v1204_v56, %v2224_v48 }
 0x1e5   : > { %v1208_v57 = vpop.f32.mrf.mxu1 }
 0x1e6   : > { %1346 = vst [vmem:[#allocation2 + $0xe0] sm:$0xff] %v1295_v22  ;;  %v1296_v25 = vadd.f32 %v1205_v19, %v484_v21  ;;  %v1209_v26 = vadd.f32 %v1208_v57, %v2229_v9  ;;  %v498_v21 = vld [vmem:[#allocation2 + $0x158] sm:$0xff] }
 0x1e7   : > { %v1210_v29 = vpop.f32.mrf.mxu1 }
 0x1e8   : > { %1347 = vst.msk [vmem:[#allocation2 + $0xe8] sm:$0xff] %vm1318_vm2, %v1296_v25  ;;  %v1297_v58 = vadd.f32 %v1209_v26, %v485_v24  ;;  %v1211_v37 = vadd.f32 %v1210_v29, %v2234_v14 }
 0x1ea   : > { %1348 = vst [vmem:[#allocation2 + $0xf0] sm:$0xff] %v1297_v58  ;;  %v1298_v32 = vadd.f32 %v1211_v37, %v486_v28  ;;  %v500_v28 = vld [vmem:[#allocation2 + $0x168] sm:$0xff] }
 0x1ec   : > { %1349 = vst.msk [vmem:[#allocation2 + $0xf8] sm:$0xff] %vm1318_vm2, %v1298_v32 }
 0x1ed   : > { %v1214_v35 = vpop.f32.mrf.mxu1 }
 0x1ee   : > { %v1215_v48 = vadd.f32 %v1214_v35, %v2239_v16 }
 0x1ef   : > { %v1216_v39 = vpop.f32.mrf.mxu1 }
 0x1f0   : > { %v1299_v9 = vadd.f32 %v1215_v48, %v487_v33  ;;  %v1217_v59 = vadd.f32 %v1216_v39, %v2244_v27 }
 0x1f1   : > { %v1220_v42 = vpop.f32.mrf.mxu1 }
 0x1f2   : > { %1350 = vst [vmem:[#allocation2 + $0x100] sm:$0xff] %v1299_v9  ;;  %v1300_v43 = vadd.f32 %v1217_v59, %v488_v38  ;;  %v1221_v14 = vadd.f32 %v1220_v42, %v2249_v36  ;;  %v503_v59 = vld [vmem:[#allocation2 + $0x180] sm:$0xff] }
 0x1f3   : > { %v1222_v47 = vpop.f32.mrf.mxu1 }
 0x1f4   : > { %1351 = vst.msk [vmem:[#allocation2 + $0x108] sm:$0xff] %vm1318_vm2, %v1300_v43  ;;  %v1301_v49 = vadd.f32 %v1221_v14, %v489_v41  ;;  %v1223_v16 = vadd.f32 %v1222_v47, %v2254_v46  ;;  %v1035_v46 = vpop.f32.mrf.mxu0 }
 0x1f5   : > { %v1226_v45 = vpop.f32.mrf.mxu1 }
 0x1f6   : > { %1352 = vst [vmem:[#allocation2 + $0x110] sm:$0xff] %v1301_v49  ;;  %v1302_v3 = vadd.f32 %v1223_v16, %v490_v44  ;;  %v1227_v27 = vadd.f32 %v1226_v45, %v2259_v50  ;;  %v1037_v54 = vpop.f32.mrf.mxu0 }
 0x1f7   : > { %v1228_v51 = vpop.f32.mrf.mxu1 }
 0x1f8   : > { %1353 = vst.msk [vmem:[#allocation2 + $0x118] sm:$0xff] %vm1318_vm2, %v1302_v3  ;;  %v1303_v36 = vadd.f32 %v1227_v27, %v491_v62  ;;  %v1229_v7 = vadd.f32 %v1228_v51, %v2264_v53  ;;  %v1041_v20 = vpop.f32.mrf.mxu0 }
 0x1f9   : > { %v1232_v63 = vpop.f32.mrf.mxu1 }
 0x1fa   : > { %1354 = vst [vmem:[#allocation2 + $0x120] sm:$0xff] %v1303_v36  ;;  %v1304_v52 = vadd.f32 %v1229_v7, %v492_v40  ;;  %v1233_v55 = vadd.f32 %v1232_v63, %v1017_v6  ;;  %v497_v6 = vld [vmem:[#allocation2 + $0x150] sm:$0xff]  ;;  %v1043_v26 = vpop.f32.mrf.mxu0 }
 0x1fb   : > { %v1234_v0 = vpop.f32.mrf.mxu1 }
 0x1fc   : > { %1355 = vst.msk [vmem:[#allocation2 + $0x128] sm:$0xff] %vm1318_vm2, %v1304_v52  ;;  %v1305_v13 = vadd.f32 %v1233_v55, %v493_v8  ;;  %v1235_v50 = vadd.f32 %v1234_v0, %v1019_v23  ;;  %v499_v23 = vld [vmem:[#allocation2 + $0x160] sm:$0xff]  ;;  %v1047_v48 = vpop.f32.mrf.mxu0 }
 0x1fd   : > { %v1238_v15 = vpop.f32.mrf.mxu1 }
 0x1fe   : > { %1356 = vst [vmem:[#allocation2 + $0x130] sm:$0xff] %v1305_v13  ;;  %v1306_v2 = vadd.f32 %v1235_v50, %v494_v10  ;;  %v1239_v17 = vadd.f32 %v1238_v15, %v1023_v31  ;;  %v501_v31 = vld [vmem:[#allocation2 + $0x170] sm:$0xff]  ;;  %v1049_v14 = vpop.f32.mrf.mxu0 }
 0x1ff   : > { %v1240_v53 = vpop.f32.mrf.mxu1 }
 0x200   : > { %1357 = vst.msk [vmem:[#allocation2 + $0x138] sm:$0xff] %vm1318_vm2, %v1306_v2  ;;  %v1307_v4 = vadd.f32 %v1239_v17, %v495_v60  ;;  %v1241_v18 = vadd.f32 %v1240_v53, %v1025_v34  ;;  %v502_v34 = vld [vmem:[#allocation2 + $0x178] sm:$0xff] }
 0x201   : > { %v1244_v30 = vpop.f32.mrf.mxu1 }
 0x202   : > { %1358 = vst [vmem:[#allocation2 + $0x140] sm:$0xff] %v1307_v4  ;;  %v1308_v11 = vadd.f32 %v1241_v18, %v496_v1  ;;  %v1245_v12 = vadd.f32 %v1244_v30, %v1029_v61  ;;  %v504_v61 = vld [vmem:[#allocation2 + $0x188] sm:$0xff] }
 0x203   : > { %v1246_v56 = vpop.f32.mrf.mxu1 }
 0x204   : > { %1359 = vst.msk [vmem:[#allocation2 + $0x148] sm:$0xff] %vm1318_vm2, %v1308_v11  ;;  %v1309_v22 = vadd.f32 %v1245_v12, %v497_v6  ;;  %v1247_v19 = vadd.f32 %v1246_v56, %v1031_v5 }
 0x205   : > { %v1250_v24 = vpop.f32.mrf.mxu1 }
 0x206   : > { %1360 = vst [vmem:[#allocation2 + $0x150] sm:$0xff] %v1309_v22  ;;  %v1310_v57 = vadd.f32 %v1247_v19, %v498_v21  ;;  %v1251_v25 = vadd.f32 %v1250_v24, %v1035_v46 }
 0x207   : > { %v1252_v29 = vpop.f32.mrf.mxu1 }
 0x208   : > { %1361 = vst.msk [vmem:[#allocation2 + $0x158] sm:$0xff] %vm1318_vm2, %v1310_v57  ;;  %v1311_v58 = vadd.f32 %v1251_v25, %v499_v23  ;;  %v1253_v37 = vadd.f32 %v1252_v29, %v1037_v54 }
 0x209   : > { %v1256_v32 = vpop.f32.mrf.mxu1 }
 0x20a   : > { %1362 = vst [vmem:[#allocation2 + $0x160] sm:$0xff] %v1311_v58  ;;  %v1312_v33 = vadd.f32 %v1253_v37, %v500_v28  ;;  %v1257_v35 = vadd.f32 %v1256_v32, %v1041_v20 }
 0x20b   : > { %v1258_v38 = vpop.f32.mrf.mxu1 }
 0x20c   : > { %1363 = vst.msk [vmem:[#allocation2 + $0x168] sm:$0xff] %vm1318_vm2, %v1312_v33  ;;  %v1313_v39 = vadd.f32 %v1257_v35, %v501_v31  ;;  %v1259_v9 = vadd.f32 %v1258_v38, %v1043_v26 }
 0x20d   : > { %v1262_v41 = vpop.f32.mrf.mxu1 }
 0x20e   : > { %1364 = vst [vmem:[#allocation2 + $0x170] sm:$0xff] %v1313_v39  ;;  %v1314_v42 = vadd.f32 %v1259_v9, %v502_v34  ;;  %v1263_v43 = vadd.f32 %v1262_v41, %v1047_v48 }
 0x20f   : > { %v1264_v44 = vpop.f32.mrf.mxu1 }
 0x210   : > { %1365 = vst.msk [vmem:[#allocation2 + $0x178] sm:$0xff] %vm1318_vm2, %v1314_v42  ;;  %v1315_v47 = vadd.f32 %v1263_v43, %v503_v59  ;;  %v1265_v49 = vadd.f32 %v1264_v44, %v1049_v14  ;;  %1371 = sbr.rel (%p1588_p6) target bundleno = 559 (0x22f), region = 36 }
 0x212   : > { %1366 = vst [vmem:[#allocation2 + $0x180] sm:$0xff] %v1315_v47  ;;  %v1316_v16 = vadd.f32 %v1265_v49, %v504_v61 }
 0x214   : > { %1367 = vst.msk [vmem:[#allocation2 + $0x188] sm:$0xff] %vm1318_vm2, %v1316_v16 }
 0x215   : > { %v1372_v62 = vld [vmem:[#allocation2] sm:$0xff]  ;;  %v1373_v45 = vld [vmem:[#allocation2 + $0x8] sm:$0xff]  ;;  %v1374_v3 = vld [vmem:[#allocation2 + $0x10] sm:$0xff] }
 0x216   : > { %1422 = vst [vmem:[%s2478_s2] sm:$0xff] %v1372_v62  ;;  %1423 = vst.msk [vmem:[%s2478_s2 + $0x8] sm:$0xff] %vm1318_vm2, %v1373_v45  ;;  %v1375_v27 = vld [vmem:[#allocation2 + $0x18] sm:$0xff]  ;;  %v1376_v5 = vld [vmem:[#allocation2 + $0x20] sm:$0xff] }
 0x217   : > { %1424 = vst [vmem:[%s2478_s2 + $0x10] sm:$0xff] %v1374_v3  ;;  %v1377_v40 = vld [vmem:[#allocation2 + $0x28] sm:$0xff]  ;;  %1425 = vst.msk [vmem:[%s2478_s2 + $0x18] sm:$0xff] %vm1318_vm2, %v1375_v27  ;;  %v1378_v51 = vld [vmem:[#allocation2 + $0x30] sm:$0xff] }
 0x218   : > { %1426 = vst [vmem:[%s2478_s2 + $0x20] sm:$0xff] %v1376_v5  ;;  %1427 = vst.msk [vmem:[%s2478_s2 + $0x28] sm:$0xff] %vm1318_vm2, %v1377_v40  ;;  %v1379_v36 = vld [vmem:[#allocation2 + $0x38] sm:$0xff]  ;;  %v1380_v7 = vld [vmem:[#allocation2 + $0x40] sm:$0xff] }
 0x219   : > { %1428 = vst [vmem:[%s2478_s2 + $0x30] sm:$0xff] %v1378_v51  ;;  %1429 = vst.msk [vmem:[%s2478_s2 + $0x38] sm:$0xff] %vm1318_vm2, %v1379_v36  ;;  %v1381_v8 = vld [vmem:[#allocation2 + $0x48] sm:$0xff]  ;;  %v1382_v63 = vld [vmem:[#allocation2 + $0x50] sm:$0xff] }
 0x21a   : > { %1430 = vst [vmem:[%s2478_s2 + $0x40] sm:$0xff] %v1380_v7  ;;  %v1383_v52 = vld [vmem:[#allocation2 + $0x58] sm:$0xff]  ;;  %1431 = vst.msk [vmem:[%s2478_s2 + $0x48] sm:$0xff] %vm1318_vm2, %v1381_v8  ;;  %v1384_v55 = vld [vmem:[#allocation2 + $0x60] sm:$0xff] }
 0x21b   : > { %1432 = vst [vmem:[%s2478_s2 + $0x50] sm:$0xff] %v1382_v63  ;;  %1433 = vst.msk [vmem:[%s2478_s2 + $0x58] sm:$0xff] %vm1318_vm2, %v1383_v52  ;;  %v1385_v46 = vld [vmem:[#allocation2 + $0x68] sm:$0xff]  ;;  %v1386_v10 = vld [vmem:[#allocation2 + $0x70] sm:$0xff] }
 0x21c   : > { %1434 = vst [vmem:[%s2478_s2 + $0x60] sm:$0xff] %v1384_v55  ;;  %1435 = vst.msk [vmem:[%s2478_s2 + $0x68] sm:$0xff] %vm1318_vm2, %v1385_v46  ;;  %v1387_v0 = vld [vmem:[#allocation2 + $0x78] sm:$0xff]  ;;  %v1388_v13 = vld [vmem:[#allocation2 + $0x80] sm:$0xff] }
 0x21d   : > { %1436 = vst [vmem:[%s2478_s2 + $0x70] sm:$0xff] %v1386_v10  ;;  %v1389_v50 = vld [vmem:[#allocation2 + $0x88] sm:$0xff]  ;;  %1437 = vst.msk [vmem:[%s2478_s2 + $0x78] sm:$0xff] %vm1318_vm2, %v1387_v0  ;;  %v1390_v60 = vld [vmem:[#allocation2 + $0x90] sm:$0xff] }
 0x21e   : > { %1438 = vst [vmem:[%s2478_s2 + $0x80] sm:$0xff] %v1388_v13  ;;  %1439 = vst.msk [vmem:[%s2478_s2 + $0x88] sm:$0xff] %vm1318_vm2, %v1389_v50  ;;  %v1391_v15 = vld [vmem:[#allocation2 + $0x98] sm:$0xff]  ;;  %v1392_v2 = vld [vmem:[#allocation2 + $0xa0] sm:$0xff] }
 0x21f   : > { %1440 = vst [vmem:[%s2478_s2 + $0x90] sm:$0xff] %v1390_v60  ;;  %1441 = vst.msk [vmem:[%s2478_s2 + $0x98] sm:$0xff] %vm1318_vm2, %v1391_v15  ;;  %v1393_v17 = vld [vmem:[#allocation2 + $0xa8] sm:$0xff]  ;;  %v1394_v54 = vld [vmem:[#allocation2 + $0xb0] sm:$0xff] }
 0x220   : > { %1442 = vst [vmem:[%s2478_s2 + $0xa0] sm:$0xff] %v1392_v2  ;;  %v1395_v1 = vld [vmem:[#allocation2 + $0xb8] sm:$0xff]  ;;  %1443 = vst.msk [vmem:[%s2478_s2 + $0xa8] sm:$0xff] %vm1318_vm2, %v1393_v17  ;;  %v1396_v53 = vld [vmem:[#allocation2 + $0xc0] sm:$0xff] }
 0x221   : > { %1444 = vst [vmem:[%s2478_s2 + $0xb0] sm:$0xff] %v1394_v54  ;;  %1445 = vst.msk [vmem:[%s2478_s2 + $0xb8] sm:$0xff] %vm1318_vm2, %v1395_v1  ;;  %v1397_v4 = vld [vmem:[#allocation2 + $0xc8] sm:$0xff]  ;;  %v1398_v18 = vld [vmem:[#allocation2 + $0xd0] sm:$0xff] }
 0x222   : > { %1446 = vst [vmem:[%s2478_s2 + $0xc0] sm:$0xff] %v1396_v53  ;;  %1447 = vst.msk [vmem:[%s2478_s2 + $0xc8] sm:$0xff] %vm1318_vm2, %v1397_v4  ;;  %v1399_v6 = vld [vmem:[#allocation2 + $0xd8] sm:$0xff]  ;;  %v1400_v30 = vld [vmem:[#allocation2 + $0xe0] sm:$0xff] }
 0x223   : > { %1448 = vst [vmem:[%s2478_s2 + $0xd0] sm:$0xff] %v1398_v18  ;;  %v1401_v11 = vld [vmem:[#allocation2 + $0xe8] sm:$0xff]  ;;  %1449 = vst.msk [vmem:[%s2478_s2 + $0xd8] sm:$0xff] %vm1318_vm2, %v1399_v6  ;;  %v1402_v12 = vld [vmem:[#allocation2 + $0xf0] sm:$0xff] }
 0x224   : > { %1450 = vst [vmem:[%s2478_s2 + $0xe0] sm:$0xff] %v1400_v30  ;;  %1451 = vst.msk [vmem:[%s2478_s2 + $0xe8] sm:$0xff] %vm1318_vm2, %v1401_v11  ;;  %v1403_v20 = vld [vmem:[#allocation2 + $0xf8] sm:$0xff]  ;;  %v1404_v21 = vld [vmem:[#allocation2 + $0x100] sm:$0xff] }
 0x225   : > { %1452 = vst [vmem:[%s2478_s2 + $0xf0] sm:$0xff] %v1402_v12  ;;  %1453 = vst.msk [vmem:[%s2478_s2 + $0xf8] sm:$0xff] %vm1318_vm2, %v1403_v20  ;;  %v1405_v56 = vld [vmem:[#allocation2 + $0x108] sm:$0xff]  ;;  %v1406_v22 = vld [vmem:[#allocation2 + $0x110] sm:$0xff] }
 0x226   : > { %1454 = vst [vmem:[%s2478_s2 + $0x100] sm:$0xff] %v1404_v21  ;;  %v1407_v19 = vld [vmem:[#allocation2 + $0x118] sm:$0xff]  ;;  %1455 = vst.msk [vmem:[%s2478_s2 + $0x108] sm:$0xff] %vm1318_vm2, %v1405_v56  ;;  %v1408_v23 = vld [vmem:[#allocation2 + $0x120] sm:$0xff] }
 0x227   : > { %1456 = vst [vmem:[%s2478_s2 + $0x110] sm:$0xff] %v1406_v22  ;;  %1457 = vst.msk [vmem:[%s2478_s2 + $0x118] sm:$0xff] %vm1318_vm2, %v1407_v19  ;;  %v1409_v24 = vld [vmem:[#allocation2 + $0x128] sm:$0xff]  ;;  %v1410_v57 = vld [vmem:[#allocation2 + $0x130] sm:$0xff] }
 0x228   : > { %1458 = vst [vmem:[%s2478_s2 + $0x120] sm:$0xff] %v1408_v23  ;;  %1459 = vst.msk [vmem:[%s2478_s2 + $0x128] sm:$0xff] %vm1318_vm2, %v1409_v24  ;;  %v1411_v25 = vld [vmem:[#allocation2 + $0x138] sm:$0xff]  ;;  %v1412_v26 = vld [vmem:[#allocation2 + $0x140] sm:$0xff] }
 0x229   : > { %1460 = vst [vmem:[%s2478_s2 + $0x130] sm:$0xff] %v1410_v57  ;;  %v1413_v28 = vld [vmem:[#allocation2 + $0x148] sm:$0xff]  ;;  %1461 = vst.msk [vmem:[%s2478_s2 + $0x138] sm:$0xff] %vm1318_vm2, %v1411_v25  ;;  %v1414_v29 = vld [vmem:[#allocation2 + $0x150] sm:$0xff] }
 0x22a   : > { %1462 = vst [vmem:[%s2478_s2 + $0x140] sm:$0xff] %v1412_v26  ;;  %1463 = vst.msk [vmem:[%s2478_s2 + $0x148] sm:$0xff] %vm1318_vm2, %v1413_v28  ;;  %v1415_v58 = vld [vmem:[#allocation2 + $0x158] sm:$0xff]  ;;  %v1416_v37 = vld [vmem:[#allocation2 + $0x160] sm:$0xff] }
 0x22b   : > { %1464 = vst [vmem:[%s2478_s2 + $0x150] sm:$0xff] %v1414_v29  ;;  %1465 = vst.msk [vmem:[%s2478_s2 + $0x158] sm:$0xff] %vm1318_vm2, %v1415_v58  ;;  %v1417_v31 = vld [vmem:[#allocation2 + $0x168] sm:$0xff]  ;;  %v1418_v32 = vld [vmem:[#allocation2 + $0x170] sm:$0xff] }
 0x22c   : > { %1466 = vst [vmem:[%s2478_s2 + $0x160] sm:$0xff] %v1416_v37  ;;  %v1419_v33 = vld [vmem:[#allocation2 + $0x178] sm:$0xff]  ;;  %1467 = vst.msk [vmem:[%s2478_s2 + $0x168] sm:$0xff] %vm1318_vm2, %v1417_v31  ;;  %v1420_v35 = vld [vmem:[#allocation2 + $0x180] sm:$0xff] }
 0x22d   : > { %1468 = vst [vmem:[%s2478_s2 + $0x170] sm:$0xff] %v1418_v32  ;;  %1469 = vst.msk [vmem:[%s2478_s2 + $0x178] sm:$0xff] %vm1318_vm2, %v1419_v33  ;;  %v1421_v48 = vld [vmem:[#allocation2 + $0x188] sm:$0xff] }
 0x22e   : > { %1470 = vst [vmem:[%s2478_s2 + $0x180] sm:$0xff] %v1420_v35  ;;  %1471 = vst.msk [vmem:[%s2478_s2 + $0x188] sm:$0xff] %vm1318_vm2, %v1421_v48 }
 0x22f PF: > { %s12_s11 = sadd.s32 1, %s1831_s11   ;;  %s2479_s9 = smov %s1827_s10 }
 0x230   : > { %p9_p7 = scmp.ge.s32.totalorder %s12_s11, 5   ;;  %s2480_s10 = smov %s2482_s12 }
 0x232   :  { %11 = sbr.rel (!%p9_p7) target bundleno = 2 (0x2), region = 69 }

</bundles_post_ra>
